<compile_context>
chip_gen: v5e
topology: v5e:2x2
jax: 0.10.0
libtpu: 0.0.40
codegen_flags: <defaults>
</compile_context>

<pallas_src>
import numpy as np
import jax
import jax.numpy as jnp
from jax.experimental import pallas as pl
from jax.experimental.pallas import tpu as pltpu

SQRT_HALF = 0.7071067811865476


# ----------------------------------------------------------------------------
# elementwise helpers (usable both inside Pallas kernels and in the JAX ref)
# ----------------------------------------------------------------------------
def _erf(x):
    # Abramowitz & Stegun 7.1.26 rational approximation, |err| <= 1.5e-7.
    p = 0.3275911
    a1, a2, a3, a4, a5 = (0.254829592, -0.284496736, 1.421413741,
                          -1.453152027, 1.061405429)
    sgn = jnp.where(x >= 0.0, 1.0, -1.0)
    ax = jnp.abs(x)
    t = 1.0 / (1.0 + p * ax)
    poly = ((((a5 * t + a4) * t + a3) * t + a2) * t + a1) * t
    return sgn * (1.0 - poly * jnp.exp(-ax * ax))


def _gelu(x):
    # exact (erf-based) GELU, matching torch.nn.functional.gelu default
    return 0.5 * x * (1.0 + _erf(x * SQRT_HALF))


def _layer_norm(x, g, b, eps=1e-5):
    m = jnp.mean(x, axis=-1, keepdims=True)
    xc = x - m
    v = jnp.mean(xc * xc, axis=-1, keepdims=True)
    return xc * jax.lax.rsqrt(v + eps) * g + b


def _aligned_tile(n, target, aligns=(128, 8), minimum=1):
    """Largest t <= target with n % t == 0 and t a multiple of one of `aligns`
    (preference order) and t >= minimum; falls back to the full dim n (always
    a legal block shape)."""
    target = min(target, n)
    for a in aligns:
        t = (target // a) * a
        while t >= max(a, minimum):
            if n % t == 0:
                return t
            t -= a
    return n


def _default_vmem_limit():
    """Per-generation scoped VMEM limit: ~100 MiB on 128 MiB parts (v5e/v6e),
    <= ~56 MiB on 64 MiB parts (v7x)."""
    try:
        cap = int(pltpu.get_tpu_info().vmem_capacity_bytes)
    except Exception:
        return 48 * 1024 * 1024
    if cap >= 128 * 1024 * 1024:
        return 100 * 1024 * 1024
    return max(32 * 1024 * 1024, min(56 * 1024 * 1024, (cap * 7) // 8))


# ----------------------------------------------------------------------------
# single-buffered constant-weight BlockSpecs (probed once for support)
# ----------------------------------------------------------------------------
_BUFFERED_OK = None


def _buffered_weights_supported():
    global _BUFFERED_OK
    if _BUFFERED_OK is None:
        try:
            wspec = pl.BlockSpec((8, 128), lambda i: (0, 0),
                                 pipeline_mode=pl.Buffered(1))

            def k(x_ref, w_ref, o_ref):
                o_ref[...] = x_ref[...] + w_ref[...]

            out = pl.pallas_call(
                k,
                out_shape=jax.ShapeDtypeStruct((16, 128), jnp.float32),
                grid_spec=pltpu.PrefetchScalarGridSpec(
                    num_scalar_prefetch=0, grid=(2,),
                    in_specs=[pl.BlockSpec((8, 128), lambda i: (i, 0)), wspec],
                    out_specs=pl.BlockSpec((8, 128), lambda i: (i, 0))),
            )(jnp.ones((16, 128), jnp.float32), jnp.ones((8, 128), jnp.float32))
            jax.block_until_ready(out)
            _BUFFERED_OK = True
        except Exception:
            _BUFFERED_OK = False
    return _BUFFERED_OK


def _weight_spec(shape, index_map):
    """BlockSpec for a grid-constant weight block; single-buffered if supported."""
    if _buffered_weights_supported():
        return pl.BlockSpec(shape, index_map, pipeline_mode=pl.Buffered(1))
    return pl.BlockSpec(shape, index_map)


# ----------------------------------------------------------------------------
# Pallas kernels
# ----------------------------------------------------------------------------
def pos_conv_block(x, conv_w, conv_b, ln_g, ln_b, *, num_groups, kernel_size,
                   apply_ln, compute_dtype, time_tile, out_dtype, vmem_limit):
    """x + GELU(grouped_conv1d(x)) [+ fused pre-LN when layer_norm_first].

    Time-tiled grid (B, nt); the conv halo comes from the previous/next time
    blocks via clamped index maps (zeroed at the sequence edges = Conv1d zero
    padding).  Each group does ONE im2col matmul (TT, K*cg)@(K*cg, cg) with
    weights pre-laid-out as (G, K*cg, cg).  Even kernel sizes drop the trailing
    conv output implicitly (only T outputs are computed).
    """
    B, T, D = x.shape
    G = num_groups
    cg = D // G
    K = kernel_size
    PL = K // 2                  # left halo (Conv1d padding)
    PR = K - 1 - PL              # right halo
    tt = time_tile
    assert T % tt == 0, (T, tt)
    nt = T // tt
    assert tt >= PL and tt >= PR, ("conv time tile must cover the halo", tt, K)

    def kernel(xp_ref, xc_ref, xn_ref, w_ref, b_ref, g_ref, be_ref, o_ref):
        t = pl.program_id(1)
        xv = xc_ref[0].astype(jnp.float32)            # (tt, D) residual, fp32
        xc = xv.astype(compute_dtype)
        parts = []
        if PL > 0:
            left = xp_ref[0, tt - PL:, :].astype(compute_dtype)
            left = jnp.where(t == 0, jnp.zeros_like(left), left)
            parts.append(left)
        parts.append(xc)
        if PR > 0:
            right = xn_ref[0, :PR, :].astype(compute_dtype)
            right = jnp.where(t == nt - 1, jnp.zeros_like(right), right)
            parts.append(right)
        xp = jnp.concatenate(parts, axis=0)           # (tt + K - 1, D)

        outs = []
        for g in range(G):                            # static: G is small
            # TODO(synk): for large K (wav2vec2 uses K=128) build the im2col
            # columns with a fori_loop + VMEM scratch instead of a static K
            # unroll (program-size / compile-time, not correctness).
            cols = jnp.concatenate(
                [xp[kk:kk + tt, g * cg:(g + 1) * cg] for kk in range(K)],
                axis=1)                               # (tt, K*cg)
            outs.append(jnp.dot(cols, w_ref[g],
                                preferred_element_type=jnp.float32))
        conv = jnp.concatenate(outs, axis=-1) + b_ref[...]
        y = xv + _gelu(conv)
        if apply_ln:                                  # fused preprocess LN (pre-LN)
            y = _layer_norm(y, g_ref[...], be_ref[...])
        o_ref[0] = y.astype(o_ref.dtype)

    xspec_c = pl.BlockSpec((1, tt, D), lambda b, t: (b, t, 0))
    xspec_p = pl.BlockSpec((1, tt, D), lambda b, t: (b, jnp.maximum(t - 1, 0), 0))
    xspec_n = pl.BlockSpec((1, tt, D),
                           lambda b, t: (b, jnp.minimum(t + 1, nt - 1), 0))
    vspec = pl.BlockSpec((1, D), lambda b, t: (0, 0))
    itemsize = jnp.dtype(compute_dtype).itemsize
    cost = pl.CostEstimate(
        flops=int(2 * B * T * D * K * cg),
        transcendentals=int(B * T * D),
        bytes_accessed=int(2 * B * T * D * 4 + G * K * cg * cg * itemsize))
    return pl.pallas_call(
        kernel,
        out_shape=jax.ShapeDtypeStruct((B, T, D), out_dtype),
        grid_spec=pltpu.PrefetchScalarGridSpec(
            num_scalar_prefetch=0,
            grid=(B, nt),
            in_specs=[
                xspec_p, xspec_c, xspec_n,
                _weight_spec((G, K * cg, cg), lambda b, t: (0, 0, 0)),
                vspec, vspec, vspec,
            ],
            out_specs=xspec_c,
        ),
        compiler_params=pltpu.CompilerParams(
            dimension_semantics=("parallel", "parallel"),
            vmem_limit_bytes=vmem_limit),
        cost_estimate=cost,
    )(x, x, x, conv_w, conv_b, ln_g, ln_b)


def qkv_proj_block(x, ln_g, ln_b, wqkv, bqkv, *, num_heads, pre_ln,
                   compute_dtype, time_tile, vmem_limit):
    """[LN(x) if pre_ln else x] @ Wqkv + bqkv, written HEAD-MAJOR (B,H,T,Dh)
    so the flash kernel never slices 64-lane head blocks out of full-width
    values.  The 1/sqrt(Dh) scale is already folded into the Q weights."""
    B, T, D = x.shape
    H = num_heads
    Dh = D // H
    tt = time_tile
    assert T % tt == 0, (T, tt)
    nt = T // tt

    def kernel(x_ref, g_ref, be_ref, w_ref, bias_ref, q_ref, k_ref, v_ref):
        xv = x_ref[0].astype(jnp.float32)
        y = _layer_norm(xv, g_ref[...], be_ref[...]) if pre_ln else xv
        qkv = jnp.dot(y.astype(compute_dtype), w_ref[...],
                      preferred_element_type=jnp.float32) + bias_ref[...]
        qkv = qkv.astype(compute_dtype)
        # one-time relayout to head-major (each element touched exactly once)
        for h in range(H):
            lo = h * Dh
            q_ref[0, h] = qkv[:, lo:lo + Dh]
            k_ref[0, h] = qkv[:, D + lo:D + lo + Dh]
            v_ref[0, h] = qkv[:, 2 * D + lo:2 * D + lo + Dh]

    xspec = pl.BlockSpec((1, tt, D), lambda b, t: (b, t, 0))
    vspec = pl.BlockSpec((1, D), lambda b, t: (0, 0))
    hspec = pl.BlockSpec((1, H, tt, Dh), lambda b, t: (b, 0, t, 0))
    out_sds = jax.ShapeDtypeStruct((B, H, T, Dh), compute_dtype)
    itemsize = jnp.dtype(compute_dtype).itemsize
    cost = pl.CostEstimate(
        flops=int(2 * B * T * D * 3 * D),
        transcendentals=0,
        bytes_accessed=int(B * T * D * x.dtype.itemsize
                           + 3 * B * T * D * itemsize + 3 * D * D * itemsize))
    return pl.pallas_call(
        kernel,
        out_shape=(out_sds, out_sds, out_sds),
        grid_spec=pltpu.PrefetchScalarGridSpec(
            num_scalar_prefetch=0,
            grid=(B, nt),
            in_specs=[
                xspec, vspec, vspec,
                _weight_spec((D, 3 * D), lambda b, t: (0, 0)),
                pl.BlockSpec((1, 3 * D), lambda b, t: (0, 0)),
            ],
            out_specs=(hspec, hspec, hspec),
        ),
        compiler_params=pltpu.CompilerParams(
            dimension_semantics=("parallel", "parallel"),
            vmem_limit_bytes=vmem_limit),
        cost_estimate=cost,
    )(x, ln_g, ln_b, wqkv, bqkv)


def attention_block(x, q, k, v, ln_g, ln_b, wo, bo, *, pre_ln, compute_dtype,
                    q_tile, kv_tile, out_dtype, vmem_limit):
    """Flash attention over head-major Q/K/V with fused output projection,
    residual add and (post-LN mode) LayerNorm.

      pre_ln:  out = x + Wo @ attn(...)          (LN was applied in qkv kernel)
      post_ln: out = LN(x + Wo @ attn(...))

    Grid (B, nq, nk): KV axis is "arbitrary"; m/l/acc live in VMEM scratch.
    At finalize the per-head contexts are concatenated into a (TQ, D) block
    and projected with ONE full-depth (TQ, D)@(D, D) matmul.
    """
    B, T, D = x.shape
    _, H, _, Dh = q.shape
    TQ, TK = q_tile, kv_tile
    assert T % TQ == 0 and T % TK == 0, (T, TQ, TK)
    nq, nk = T // TQ, T // TK
    use_approx = (compute_dtype == jnp.bfloat16)
    # TODO(synk): key-padding / attention_mask path not implemented; this
    # kernel matches the torch module for unpadded batches (mask=None).

    def kernel(x_ref, q_ref, k_ref, v_ref, g_ref, be_ref, wo_ref, bo_ref,
               o_ref, m_sc, l_sc, acc_sc):
        kv = pl.program_id(2)

        @pl.when(kv == 0)
        def _():
            m_sc[...] = jnp.full(m_sc.shape, -1e30, jnp.float32)
            l_sc[...] = jnp.zeros(l_sc.shape, jnp.float32)
            acc_sc[...] = jnp.zeros(acc_sc.shape, jnp.float32)

        # (H, TQ, TK) scores for all heads in one batched matmul
        s = jnp.einsum('hqd,hkd->hqk', q_ref[0], k_ref[0],
                       preferred_element_type=jnp.float32)
        m_prev = m_sc[...]
        m_new = jnp.maximum(m_prev, jnp.max(s, axis=-1, keepdims=True))
        alpha = jnp.exp(m_prev - m_new)
        p = jnp.exp(s - m_new)
        l_sc[...] = alpha * l_sc[...] + jnp.sum(p, axis=-1, keepdims=True)
        acc_sc[...] = alpha * acc_sc[...] + jnp.einsum(
            'hqk,hkd->hqd', p.astype(compute_dtype), v_ref[0],
            preferred_element_type=jnp.float32)
        m_sc[...] = m_new

        @pl.when(kv == pl.num_programs(2) - 1)
        def _():
            if use_approx:
                ctx = acc_sc[...] * pl.reciprocal(l_sc[...], approx=True)
            else:
                ctx = acc_sc[...] / l_sc[...]
            # concatenate heads -> (TQ, D) and run one full-depth output proj
            ctx2 = jnp.concatenate([ctx[h] for h in range(H)], axis=-1)
            proj = jnp.dot(ctx2.astype(compute_dtype), wo_ref[...],
                           preferred_element_type=jnp.float32) + bo_ref[...]
            y = x_ref[0].astype(jnp.float32) + proj
            if not pre_ln:
                y = _layer_norm(y, g_ref[...], be_ref[...])
            o_ref[0] = y.astype(o_ref.dtype)

    xspec = pl.BlockSpec((1, TQ, D), lambda b, qi, ki: (b, qi, 0))
    vspec = pl.BlockSpec((1, D), lambda b, qi, ki: (0, 0))
    qspec = pl.BlockSpec((1, H, TQ, Dh), lambda b, qi, ki: (b, 0, qi, 0))
    kvspec = pl.BlockSpec((1, H, TK, Dh), lambda b, qi, ki: (b, 0, ki, 0))
    itemsize = jnp.dtype(compute_dtype).itemsize
    cost = pl.CostEstimate(
        flops=int(B * (4 * T * T * D + 2 * T * D * D)),
        transcendentals=int(B * H * T * T),
        bytes_accessed=int(B * T * D * (x.dtype.itemsize
                                        + jnp.dtype(out_dtype).itemsize)
                           + B * nq * 2 * T * D * itemsize
                           + D * D * itemsize))
    return pl.pallas_call(
        kernel,
        out_shape=jax.ShapeDtypeStruct((B, T, D), out_dtype),
        grid_spec=pltpu.PrefetchScalarGridSpec(
            num_scalar_prefetch=0,
            grid=(B, nq, nk),
            in_specs=[
                xspec, qspec, kvspec, kvspec, vspec, vspec,
                _weight_spec((D, D), lambda b, qi, ki: (0, 0)),
                vspec,
            ],
            out_specs=xspec,
            scratch_shapes=[
                pltpu.VMEM((H, TQ, 1), jnp.float32),     # running max m
                pltpu.VMEM((H, TQ, 1), jnp.float32),     # running denom l
                pltpu.VMEM((H, TQ, Dh), jnp.float32),    # context accumulator
            ]),
        compiler_params=pltpu.CompilerParams(
            dimension_semantics=("parallel", "parallel", "arbitrary"),
            vmem_limit_bytes=vmem_limit),
        cost_estimate=cost,
    )(x, q, k, v, ln_g, ln_b, wo, bo)


def ffn_block(x, ln_g, ln_b, w1, b1, w2, b2, fln_g, fln_b, *, pre_ln,
              apply_final_ln, time_tile, compute_dtype, out_dtype, vmem_limit):
    """Fused encoder-layer FFN, tiled over time:
       pre_ln:  out = x + FFN(LN(x))
       post_ln: out = LN(x + FFN(x))   [optionally followed by the encoder's
                                        final LayerNorm, fused on the last layer]
    """
    B, T, D = x.shape
    FF = w1.shape[1]
    tt = time_tile
    assert T % tt == 0, (T, tt)
    nt = T // tt

    def kernel(x_ref, g_ref, be_ref, w1_ref, b1_ref, w2_ref, b2_ref,
               fg_ref, fb_ref, o_ref):
        xv = x_ref[0].astype(jnp.float32)            # (tt, D)
        y = _layer_norm(xv, g_ref[...], be_ref[...]) if pre_ln else xv
        h = jnp.dot(y.astype(compute_dtype), w1_ref[...],
                    preferred_element_type=jnp.float32) + b1_ref[...]
        h = _gelu(h)
        o = jnp.dot(h.astype(compute_dtype), w2_ref[...],
                    preferred_element_type=jnp.float32) + b2_ref[...]
        yo = xv + o
        if not pre_ln:
            yo = _layer_norm(yo, g_ref[...], be_ref[...])
        if apply_final_ln:
            yo = _layer_norm(yo, fg_ref[...], fb_ref[...])
        o_ref[0] = yo.astype(o_ref.dtype)

    xspec = pl.BlockSpec((1, tt, D), lambda b, t: (b, t, 0))
    vspec = pl.BlockSpec((1, D), lambda b, t: (0, 0))
    itemsize = jnp.dtype(compute_dtype).itemsize
    cost = pl.CostEstimate(
        flops=int(4 * B * T * D * FF),
        transcendentals=int(B * T * FF),
        bytes_accessed=int(2 * B * T * D * 4 + 2 * D * FF * itemsize))
    return pl.pallas_call(
        kernel,
        out_shape=jax.ShapeDtypeStruct((B, T, D), out_dtype),
        grid_spec=pltpu.PrefetchScalarGridSpec(
            num_scalar_prefetch=0,
            grid=(B, nt),
            in_specs=[
                xspec, vspec, vspec,
                _weight_spec((D, FF), lambda b, t: (0, 0)),
                pl.BlockSpec((1, FF), lambda b, t: (0, 0)),
                _weight_spec((FF, D), lambda b, t: (0, 0)),
                vspec, vspec, vspec,
            ],
            out_specs=xspec,
        ),
        compiler_params=pltpu.CompilerParams(
            dimension_semantics=("parallel", "parallel"),
            vmem_limit_bytes=vmem_limit),
        cost_estimate=cost,
    )(x, ln_g, ln_b, w1, b1, w2, b2, fln_g, fln_b)


# ----------------------------------------------------------------------------
# Transformer.forward (eval mode)
# ----------------------------------------------------------------------------
def transformer_forward(x, kparams, *, layer_norm_first, num_heads, num_groups,
                        compute_dtype=jnp.bfloat16, stream_dtype=None,
                        q_tile=None, kv_tile=None, time_tile=None,
                        conv_time_tile=None, vmem_limit_bytes=None):
    B, T, D = x.shape
    if stream_dtype is None:
        stream_dtype = x.dtype
    if vmem_limit_bytes is None:
        vmem_limit_bytes = _default_vmem_limit()

    cg = D // num_groups
    K = kparams["conv_w"].shape[1] // cg
    PL, PR = K // 2, K - 1 - (K // 2)

    q_tile = q_tile or _aligned_tile(T, 256)
    kv_tile = kv_tile or _aligned_tile(T, 512)
    time_tile = time_tile or _aligned_tile(T, 256)
    conv_time_tile = conv_time_tile or _aligned_tile(T, 256,
                                                     minimum=max(PL, PR, 8))
    if conv_time_tile < max(PL, PR):
        conv_time_tile = T

    x = x.astype(stream_dtype)

    # _preprocess: x = x + pos_conv_embed(x); fused pre-LN; dropout == id (eval).
    x = pos_conv_block(x, kparams["conv_w"], kparams["conv_b"],
                       kparams["ln_g"], kparams["ln_b"],
                       num_groups=num_groups, kernel_size=K,
                       apply_ln=layer_norm_first, compute_dtype=compute_dtype,
                       time_tile=conv_time_tile, out_dtype=stream_dtype,
                       vmem_limit=vmem_limit_bytes)

    # TODO(synk): training-mode layer_drop (torch.rand) / dropout not modeled;
    # eval-mode forward is exact.
    n_layers = len(kparams["layers"])
    for i, lp in enumerate(kparams["layers"]):
        q, k, v = qkv_proj_block(x, lp["ln1_g"], lp["ln1_b"], lp["wqkv"],
                                 lp["bqkv"], num_heads=num_heads,
                                 pre_ln=layer_norm_first,
                                 compute_dtype=compute_dtype,
                                 time_tile=time_tile,
                                 vmem_limit=vmem_limit_bytes)
        x = attention_block(x, q, k, v, lp["ln1_g"], lp["ln1_b"], lp["wo"],
                            lp["bo"], pre_ln=layer_norm_first,
                            compute_dtype=compute_dtype, q_tile=q_tile,
                            kv_tile=kv_tile, out_dtype=stream_dtype,
                            vmem_limit=vmem_limit_bytes)
        # Post-LN encoders apply the module's final LayerNorm after the last
        # layer; fuse it into the last FFN kernel.
        apply_final = (not layer_norm_first) and (i == n_layers - 1)
        x = ffn_block(x, lp["ln2_g"], lp["ln2_b"], lp["w1"], lp["b1"],
                      lp["w2"], lp["b2"], kparams["ln_g"], kparams["ln_b"],
                      pre_ln=layer_norm_first, apply_final_ln=apply_final,
                      time_tile=time_tile, compute_dtype=compute_dtype,
                      out_dtype=stream_dtype, vmem_limit=vmem_limit_bytes)
    return x


# ----------------------------------------------------------------------------
# parameter init (PyTorch layout) and conversion to the fused kernel layout
# ----------------------------------------------------------------------------
def init_params(key, D, H, FF, K, G, num_layers):
    keys = iter(jax.random.split(key, 8 + 16 * num_layers))

    def nrm(shape, s=0.05):
        return jax.random.normal(next(keys), shape, jnp.float32) * s

    params = {
        "conv_w": nrm((D, D // G, K)),   # grouped Conv1d weight (C_out, C_in/G, K)
        "conv_b": nrm((1, D)),
        "ln_g": 1.0 + nrm((1, D), 0.1),
        "ln_b": nrm((1, D), 0.1),
        "layers": [],
    }
    for _ in range(num_layers):
        params["layers"].append({
            "wq": nrm((D, D)), "bq": nrm((1, D)),
            "wk": nrm((D, D)), "bk": nrm((1, D)),
            "wv": nrm((D, D)), "bv": nrm((1, D)),
            "wo": nrm((D, D)), "bo": nrm((1, D)),
            "ln1_g": 1.0 + nrm((1, D), 0.1), "ln1_b": nrm((1, D), 0.1),
            "w1": nrm((D, FF)), "b1": nrm((1, FF)),
            "w2": nrm((FF, D)), "b2": nrm((1, D)),
            "ln2_g": 1.0 + nrm((1, D), 0.1), "ln2_b": nrm((1, D), 0.1),
        })
    return params


def prepare_params(params, *, num_groups, num_heads, compute_dtype):
    """Torch layout -> kernel layout: per-group im2col conv weights
    (G, K*cg, cg), fused QKV with the 1/sqrt(Dh) scale folded into the Q
    columns, matmul weights stored in compute_dtype; biases / LN params fp32."""
    D = params["conv_b"].shape[-1]
    G = num_groups
    cg = D // G
    K = params["conv_w"].shape[-1]
    Dh = D // num_heads
    scale = float(Dh) ** -0.5

    w = np.asarray(params["conv_w"], np.float32)       # (D, cg, K)
    wg = np.zeros((G, K * cg, cg), np.float32)         # [g, k*cg + c_in, c_out]
    for g in range(G):
        blk = w[g * cg:(g + 1) * cg]                   # (cg_out, cg_in, K)
        wg[g] = np.transpose(blk, (2, 1, 0)).reshape(K * cg, cg)

    kp = {
        "conv_w": jnp.asarray(wg, compute_dtype),
        "conv_b": params["conv_b"],
        "ln_g": params["ln_g"], "ln_b": params["ln_b"],
        "layers": [],
    }
    for lp in params["layers"]:
        wqkv = jnp.concatenate([lp["wq"] * scale, lp["wk"], lp["wv"]], axis=1)
        bqkv = jnp.concatenate([lp["bq"] * scale, lp["bk"], lp["bv"]], axis=1)
        kp["layers"].append({
            "wqkv": wqkv.astype(compute_dtype), "bqkv": bqkv,
            "wo": lp["wo"].astype(compute_dtype), "bo": lp["bo"],
            "ln1_g": lp["ln1_g"], "ln1_b": lp["ln1_b"],
            "w1": lp["w1"].astype(compute_dtype), "b1": lp["b1"],
            "w2": lp["w2"].astype(compute_dtype), "b2": lp["b2"],
            "ln2_g": lp["ln2_g"], "ln2_b": lp["ln2_b"],
        })
    return kp


# ----------------------------------------------------------------------------
# pure-JAX reference (same math, torch-layout params, no Pallas)
# ----------------------------------------------------------------------------
def _ref_pos_conv(x, w, b, groups):
    B, T, D = x.shape
    K = w.shape[-1]
    cg = D // groups
    pad = K // 2
    xpad = jnp.pad(x, ((0, 0), (pad, pad), (0, 0)))
    outs = []
    for g in range(groups):
        xg = xpad[:, :, g * cg:(g + 1) * cg]
        wg = w[g * cg:(g + 1) * cg]                    # (cg_out, cg_in, K)
        acc = jnp.zeros((B, T, cg), jnp.float32)
        for k in range(K):
            acc = acc + jnp.einsum("bti,oi->bto", xg[:, k:k + T, :], wg[:, :, k])
        outs.append(acc)
    return jnp.concatenate(outs, axis=-1) + b


def _ref_attn(x, lp, H):
    B, T, D = x.shape
    Dh = D // H
    q = (x @ lp["wq"] + lp["bq"]) * (float(Dh) ** -0.5)
    k = x @ lp["wk"] + lp["bk"]
    v = x @ lp["wv"] + lp["bv"]
    q = q.reshape(B, T, H, Dh)
    k = k.reshape(B, T, H, Dh)
    v = v.reshape(B, T, H, Dh)
    s = jnp.einsum("bihd,bjhd->bhij", q, k)
    p = jax.nn.softmax(s, axis=-1)
    ctx = jnp.einsum("bhij,bjhd->bihd", p, v).reshape(B, T, D)
    return ctx @ lp["wo"] + lp["bo"]


def _ref_ffn(x, lp):
    return _gelu(x @ lp["w1"] + lp["b1"]) @ lp["w2"] + lp["b2"]


def ref_forward(x, params, *, layer_norm_first, num_heads, groups):
    x = x + _gelu(_ref_pos_conv(x, params["conv_w"], params["conv_b"], groups))
    if layer_norm_first:
        x = _layer_norm(x, params["ln_g"], params["ln_b"])
    for lp in params["layers"]:
        if layer_norm_first:
            x = x + _ref_attn(_layer_norm(x, lp["ln1_g"], lp["ln1_b"]), lp, num_heads)
            x = x + _ref_ffn(_layer_norm(x, lp["ln2_g"], lp["ln2_b"]), lp)
        else:
            x = x + _ref_attn(x, lp, num_heads)
            x = _layer_norm(x, lp["ln1_g"], lp["ln1_b"])
            x = x + _ref_ffn(x, lp)
            x = _layer_norm(x, lp["ln2_g"], lp["ln2_b"])
    if not layer_norm_first:
        x = _layer_norm(x, params["ln_g"], params["ln_b"])
    return x


if __name__ == "__main__":
    B, T, D = 2, 128, 128        # batch, frames, embed_dim
    H, FF = 4, 256               # attention heads, feed-forward dim
    K, G = 5, 2                  # pos-conv kernel size, groups
    NUM_LAYERS = 2

    root = jax.random.PRNGKey(0)
    kx, kp = jax.random.split(root)
    x = jax.random.normal(kx, (B, T, D), jnp.float32)
    params = init_params(kp, D, H, FF, K, G, NUM_LAYERS)

    # small, (8,128)-aligned tiles so the flash / halo / time-tiling paths are
    # all exercised with multi-step grids
    tiles = dict(q_tile=32, kv_tile=32, time_tile=32, conv_time_tile=64)

    # 1) fp32-compute path, both pre-LN and post-LN: tight structural check.
    for lnf in (False, True):
        with jax.default_matmul_precision("highest"):
            y_ref = ref_forward(x, params, layer_norm_first=lnf,
                                num_heads=H, groups=G)
        y_ref = jax.block_until_ready(y_ref)

        kp32 = prepare_params(params, num_groups=G, num_heads=H,
                              compute_dtype=jnp.float32)
        y32 = transformer_forward(x, kp32, layer_norm_first=lnf, num_heads=H,
                                  num_groups=G, compute_dtype=jnp.float32,
                                  **tiles)
        y32 = jax.block_until_ready(y32)
        assert y32.shape == (B, T, D)
        err32 = float(jnp.max(jnp.abs(y32 - y_ref)))
        assert jnp.allclose(y32, y_ref, atol=5e-3, rtol=5e-3), (lnf, err32)

    # 2) bf16-compute + bf16 inter-kernel residual stream (MXU-native path).
    with jax.default_matmul_precision("highest"):
        y_ref = ref_forward(x, params, layer_norm_first=False,
                            num_heads=H, groups=G)
    y_ref = jax.block_until_ready(y_ref)
    kpbf = prepare_params(params, num_groups=G, num_heads=H,
                          compute_dtype=jnp.bfloat16)
    ybf = transformer_forward(x, kpbf, layer_norm_first=False, num_heads=H,
                              num_groups=G, compute_dtype=jnp.bfloat16,
                              stream_dtype=jnp.bfloat16, **tiles)
    ybf = jax.block_until_ready(ybf)
    assert ybf.shape == (B, T, D)
    errbf = float(jnp.max(jnp.abs(ybf.astype(jnp.float32) - y_ref)))
    assert jnp.allclose(ybf.astype(jnp.float32), y_ref,
                        atol=1e-1, rtol=1e-1), errbf

    print("KERNEL_OK")
</pallas_src>

<mosaic_0001>
module attributes {stable_mosaic.version = 11 : i64} {
  func.func @k(%arg0: i32, %arg1: memref<8x128xf32, #tpu.memory_space<vmem>>, %arg2: memref<8x128xf32, #tpu.memory_space<vmem>>, %arg3: memref<8x128xf32, #tpu.memory_space<vmem>>) attributes {dimension_semantics = [#tpu.dimension_semantics<arbitrary>], iteration_bounds = array<i64: 2>, scalar_prefetch = 0 : i64, scratch_operands = 0 : i64, tpu.core_type = #tpu.core_type<tc>, window_params = [{transform_indices = @transform_0, window_bounds = array<i64: 8, 128>}, {pipeline_mode = #tpu.pipeline_mode<synchronous>, transform_indices = @transform_1, window_bounds = array<i64: 8, 128>}, {transform_indices = @transform_2, window_bounds = array<i64: 8, 128>}]} {
    %c0 = arith.constant 0 : index
    %c0_0 = arith.constant 0 : index
    %0 = vector.load %arg1[%c0, %c0_0] : memref<8x128xf32, #tpu.memory_space<vmem>>, vector<8x128xf32>
    %c0_1 = arith.constant 0 : index
    %c0_2 = arith.constant 0 : index
    %1 = vector.load %arg2[%c0_1, %c0_2] : memref<8x128xf32, #tpu.memory_space<vmem>>, vector<8x128xf32>
    %2 = arith.addf %0, %1 : vector<8x128xf32>
    %c0_3 = arith.constant 0 : index
    %c0_4 = arith.constant 0 : index
    %3 = vector.load %arg3[%c0_3, %c0_4] : memref<8x128xf32, #tpu.memory_space<vmem>>, vector<8x128xf32>
    tpu.vector_store %arg3[%c0_3, %c0_4], %2 {strides = array<i32>} : memref<8x128xf32, #tpu.memory_space<vmem>>, vector<8x128xf32>,
    return
  }
  func.func @transform_0(%arg0: i32) -> (i32, i32) {
    %c0_i32 = arith.constant 0 : i32
    %c0_i32_0 = arith.constant 0 : i32
    return %arg0, %c0_i32 : i32, i32
  }
  func.func @transform_1(%arg0: i32) -> (i32, i32) {
    %c0_i32 = arith.constant 0 : i32
    %c0_i32_0 = arith.constant 0 : i32
    %c0_i32_1 = arith.constant 0 : i32
    return %c0_i32, %c0_i32_0 : i32, i32
  }
  func.func @transform_2(%arg0: i32) -> (i32, i32) {
    %c0_i32 = arith.constant 0 : i32
    %c0_i32_0 = arith.constant 0 : i32
    return %arg0, %c0_i32 : i32, i32
  }
}

module attributes {stable_mosaic.version = 11 : i64} {
  func.func @kernel(%arg0: i32, %arg1: i32, %arg2: memref<1x64x128xf32, #tpu.memory_space<vmem>>, %arg3: memref<1x64x128xf32, #tpu.memory_space<vmem>>, %arg4: memref<1x64x128xf32, #tpu.memory_space<vmem>>, %arg5: memref<2x320x64xf32, #tpu.memory_space<vmem>>, %arg6: memref<1x128xf32, #tpu.memory_space<vmem>>, %arg7: memref<1x128xf32, #tpu.memory_space<vmem>>, %arg8: memref<1x128xf32, #tpu.memory_space<vmem>>, %arg9: memref<1x64x128xf32, #tpu.memory_space<vmem>>) attributes {dimension_semantics = [#tpu.dimension_semantics<parallel>, #tpu.dimension_semantics<parallel>], iteration_bounds = array<i64: 2, 2>, scalar_prefetch = 0 : i64, scratch_operands = 0 : i64, tpu.core_type = #tpu.core_type<tc>, window_params = [{transform_indices = @transform_0, window_bounds = array<i64: 1, 64, 128>}, {transform_indices = @transform_1, window_bounds = array<i64: 1, 64, 128>}, {transform_indices = @transform_2, window_bounds = array<i64: 1, 64, 128>}, {pipeline_mode = #tpu.pipeline_mode<synchronous>, transform_indices = @transform_3, window_bounds = array<i64: 2, 320, 64>}, {pipeline_mode = #tpu.pipeline_mode<synchronous>, transform_indices = @transform_4, window_bounds = array<i64: 1, 128>}, {pipeline_mode = #tpu.pipeline_mode<synchronous>, transform_indices = @transform_5, window_bounds = array<i64: 1, 128>}, {pipeline_mode = #tpu.pipeline_mode<synchronous>, transform_indices = @transform_6, window_bounds = array<i64: 1, 128>}, {transform_indices = @transform_7, window_bounds = array<i64: 1, 64, 128>}]} {
    %c0 = arith.constant 0 : index
    %c0_0 = arith.constant 0 : index
    %c0_1 = arith.constant 0 : index
    %0 = vector.load %arg3[%c0, %c0_0, %c0_1] : memref<1x64x128xf32, #tpu.memory_space<vmem>>, vector<1x64x128xf32>
    %1 = vector.shape_cast %0 : vector<1x64x128xf32> to vector<64x128xf32>
    %c0_2 = arith.constant 0 : index
    %c62 = arith.constant 62 : index
    %c0_3 = arith.constant 0 : index
    %2 = vector.load %arg2[%c0_2, %c62, %c0_3] : memref<1x64x128xf32, #tpu.memory_space<vmem>>, vector<1x2x128xf32>
    %3 = vector.shape_cast %2 : vector<1x2x128xf32> to vector<2x128xf32>
    %c0_i32 = arith.constant 0 : i32
    %4 = arith.cmpi eq, %arg1, %c0_i32 : i32
    %cst = arith.constant 0.000000e+00 : f32
    %5 = vector.broadcast %cst : f32 to vector<2x128xf32>
    %6 = arith.select %4, %5, %3 : vector<2x128xf32>
    %c0_4 = arith.constant 0 : index
    %c0_5 = arith.constant 0 : index
    %c0_6 = arith.constant 0 : index
    %7 = vector.load %arg4[%c0_4, %c0_5, %c0_6] : memref<1x64x128xf32, #tpu.memory_space<vmem>>, vector<1x2x128xf32>
    %8 = vector.shape_cast %7 : vector<1x2x128xf32> to vector<2x128xf32>
    %c1_i32 = arith.constant 1 : i32
    %9 = arith.cmpi eq, %arg1, %c1_i32 : i32
    %cst_7 = arith.constant 0.000000e+00 : f32
    %10 = vector.broadcast %cst_7 : f32 to vector<2x128xf32>
    %11 = arith.select %9, %10, %8 : vector<2x128xf32>
    %12 = tpu.concatenate %6, %1, %11 in 0 : vector<2x128xf32>, vector<64x128xf32>, vector<2x128xf32> -> vector<68x128xf32>
    %13 = vector.extract_strided_slice %12 {offsets = [0, 0], sizes = [64, 64], strides = [1, 1]} : vector<68x128xf32> to vector<64x64xf32>
    %14 = vector.extract_strided_slice %12 {offsets = [1, 0], sizes = [64, 64], strides = [1, 1]} : vector<68x128xf32> to vector<64x64xf32>
    %15 = vector.extract_strided_slice %12 {offsets = [2, 0], sizes = [64, 64], strides = [1, 1]} : vector<68x128xf32> to vector<64x64xf32>
    %16 = vector.extract_strided_slice %12 {offsets = [3, 0], sizes = [64, 64], strides = [1, 1]} : vector<68x128xf32> to vector<64x64xf32>
    %17 = vector.extract_strided_slice %12 {offsets = [4, 0], sizes = [64, 64], strides = [1, 1]} : vector<68x128xf32> to vector<64x64xf32>
    %18 = tpu.concatenate %13, %14, %15, %16, %17 in 1 : vector<64x64xf32>, vector<64x64xf32>, vector<64x64xf32>, vector<64x64xf32>, vector<64x64xf32> -> vector<64x320xf32>
    %c0_8 = arith.constant 0 : index
    %c0_9 = arith.constant 0 : index
    %c0_10 = arith.constant 0 : index
    %19 = vector.load %arg5[%c0_8, %c0_9, %c0_10] : memref<2x320x64xf32, #tpu.memory_space<vmem>>, vector<1x320x64xf32>
    %20 = vector.shape_cast %19 : vector<1x320x64xf32> to vector<320x64xf32>
    %cst_11 = arith.constant dense<0.000000e+00> : vector<64x64xf32>
    %21 = tpu.matmul %18, %20, %cst_11 {dimension_numbers = #tpu.dot_dimension_numbers<[1], [0], [0], [1], [0, 0, 1, 1], [], []>} : vector<64x320xf32>, vector<320x64xf32>, vector<64x64xf32> -> vector<64x64xf32>
    %22 = vector.extract_strided_slice %12 {offsets = [0, 64], sizes = [64, 64], strides = [1, 1]} : vector<68x128xf32> to vector<64x64xf32>
    %23 = vector.extract_strided_slice %12 {offsets = [1, 64], sizes = [64, 64], strides = [1, 1]} : vector<68x128xf32> to vector<64x64xf32>
    %24 = vector.extract_strided_slice %12 {offsets = [2, 64], sizes = [64, 64], strides = [1, 1]} : vector<68x128xf32> to vector<64x64xf32>
    %25 = vector.extract_strided_slice %12 {offsets = [3, 64], sizes = [64, 64], strides = [1, 1]} : vector<68x128xf32> to vector<64x64xf32>
    %26 = vector.extract_strided_slice %12 {offsets = [4, 64], sizes = [64, 64], strides = [1, 1]} : vector<68x128xf32> to vector<64x64xf32>
    %27 = tpu.concatenate %22, %23, %24, %25, %26 in 1 : vector<64x64xf32>, vector<64x64xf32>, vector<64x64xf32>, vector<64x64xf32>, vector<64x64xf32> -> vector<64x320xf32>
    %c1 = arith.constant 1 : index
    %c0_12 = arith.constant 0 : index
    %c0_13 = arith.constant 0 : index
    %28 = vector.load %arg5[%c1, %c0_12, %c0_13] : memref<2x320x64xf32, #tpu.memory_space<vmem>>, vector<1x320x64xf32>
    %29 = vector.shape_cast %28 : vector<1x320x64xf32> to vector<320x64xf32>
    %cst_14 = arith.constant dense<0.000000e+00> : vector<64x64xf32>
    %30 = tpu.matmul %27, %29, %cst_14 {dimension_numbers = #tpu.dot_dimension_numbers<[1], [0], [0], [1], [0, 0, 1, 1], [], []>} : vector<64x320xf32>, vector<320x64xf32>, vector<64x64xf32> -> vector<64x64xf32>
    %31 = tpu.concatenate %21, %30 in 1 : vector<64x64xf32>, vector<64x64xf32> -> vector<64x128xf32>
    %c0_15 = arith.constant 0 : index
    %c0_16 = arith.constant 0 : index
    %32 = vector.load %arg6[%c0_15, %c0_16] : memref<1x128xf32, #tpu.memory_space<vmem>>, vector<1x128xf32>
    %33 = vector.broadcast %32 : vector<1x128xf32> to vector<64x128xf32>
    %34 = arith.addf %31, %33 : vector<64x128xf32>
    %cst_17 = arith.constant 5.000000e-01 : f32
    %35 = vector.broadcast %cst_17 : f32 to vector<64x128xf32>
    %36 = arith.mulf %35, %34 : vector<64x128xf32>
    %cst_18 = arith.constant 0.707106769 : f32
    %37 = vector.broadcast %cst_18 : f32 to vector<64x128xf32>
    %38 = arith.mulf %34, %37 : vector<64x128xf32>
    %cst_19 = arith.constant 0.000000e+00 : f32
    %39 = vector.broadcast %cst_19 : f32 to vector<64x128xf32>
    %40 = arith.cmpf oge, %38, %39 : vector<64x128xf32>
    %cst_20 = arith.constant 1.000000e+00 : f32
    %cst_21 = arith.constant -1.000000e+00 : f32
    %41 = vector.broadcast %cst_20 : f32 to vector<64x128xf32>
    %42 = vector.broadcast %cst_21 : f32 to vector<64x128xf32>
    %43 = arith.select %40, %41, %42 : vector<64x128xi1>, vector<64x128xf32>
    %44 = math.absf %38 : vector<64x128xf32>
    %cst_22 = arith.constant 0.327591091 : f32
    %45 = vector.broadcast %cst_22 : f32 to vector<64x128xf32>
    %46 = arith.mulf %45, %44 : vector<64x128xf32>
    %cst_23 = arith.constant 1.000000e+00 : f32
    %47 = vector.broadcast %cst_23 : f32 to vector<64x128xf32>
    %48 = arith.addf %47, %46 : vector<64x128xf32>
    %cst_24 = arith.constant 1.000000e+00 : f32
    %49 = vector.broadcast %cst_24 : f32 to vector<64x128xf32>
    %50 = arith.divf %49, %48 : vector<64x128xf32>
    %cst_25 = arith.constant 1.06140542 : f32
    %51 = vector.broadcast %cst_25 : f32 to vector<64x128xf32>
    %52 = arith.mulf %51, %50 : vector<64x128xf32>
    %cst_26 = arith.constant -1.45315206 : f32
    %53 = vector.broadcast %cst_26 : f32 to vector<64x128xf32>
    %54 = arith.addf %52, %53 : vector<64x128xf32>
    %55 = arith.mulf %54, %50 : vector<64x128xf32>
    %cst_27 = arith.constant 1.42141378 : f32
    %56 = vector.broadcast %cst_27 : f32 to vector<64x128xf32>
    %57 = arith.addf %55, %56 : vector<64x128xf32>
    %58 = arith.mulf %57, %50 : vector<64x128xf32>
    %cst_28 = arith.constant -0.284496725 : f32
    %59 = vector.broadcast %cst_28 : f32 to vector<64x128xf32>
    %60 = arith.addf %58, %59 : vector<64x128xf32>
    %61 = arith.mulf %60, %50 : vector<64x128xf32>
    %cst_29 = arith.constant 0.254829586 : f32
    %62 = vector.broadcast %cst_29 : f32 to vector<64x128xf32>
    %63 = arith.addf %61, %62 : vector<64x128xf32>
    %64 = arith.mulf %63, %50 : vector<64x128xf32>
    %cst_30 = arith.constant 0.000000e+00 : f32
    %65 = vector.broadcast %cst_30 : f32 to vector<64x128xf32>
    %66 = arith.subf %65, %44 : vector<64x128xf32>
    %67 = arith.mulf %66, %44 : vector<64x128xf32>
    %68 = math.exp %67 : vector<64x128xf32>
    %69 = arith.mulf %64, %68 : vector<64x128xf32>
    %cst_31 = arith.constant 1.000000e+00 : f32
    %70 = vector.broadcast %cst_31 : f32 to vector<64x128xf32>
    %71 = arith.subf %70, %69 : vector<64x128xf32>
    %72 = arith.mulf %43, %71 : vector<64x128xf32>
    %cst_32 = arith.constant 1.000000e+00 : f32
    %73 = vector.broadcast %cst_32 : f32 to vector<64x128xf32>
    %74 = arith.addf %73, %72 : vector<64x128xf32>
    %75 = arith.mulf %36, %74 : vector<64x128xf32>
    %76 = arith.addf %1, %75 : vector<64x128xf32>
    %c0_33 = arith.constant 0 : index
    %c0_34 = arith.constant 0 : index
    %c0_35 = arith.constant 0 : index
    %77 = vector.load %arg9[%c0_33, %c0_34, %c0_35] : memref<1x64x128xf32, #tpu.memory_space<vmem>>, vector<1x64x128xf32>
    %78 = vector.shape_cast %77 : vector<1x64x128xf32> to vector<64x128xf32>
    %79 = vector.shape_cast %76 : vector<64x128xf32> to vector<1x64x128xf32>
    tpu.vector_store %arg9[%c0_33, %c0_34, %c0_35], %79 {strides = array<i32>} : memref<1x64x128xf32, #tpu.memory_space<vmem>>, vector<1x64x128xf32>,
    return
  }
  func.func @transform_0(%arg0: i32, %arg1: i32) -> (i32, i32, i32) {
    %c1_i32 = arith.constant 1 : i32
    %0 = arith.subi %arg1, %c1_i32 : i32
    %c0_i32 = arith.constant 0 : i32
    %1 = arith.maxsi %0, %c0_i32 : i32
    %c0_i32_0 = arith.constant 0 : i32
    %c0_i32_1 = arith.constant 0 : i32
    return %arg0, %1, %c0_i32_0 : i32, i32, i32
  }
  func.func @transform_1(%arg0: i32, %arg1: i32) -> (i32, i32, i32) {
    %c0_i32 = arith.constant 0 : i32
    %c0_i32_0 = arith.constant 0 : i32
    return %arg0, %arg1, %c0_i32 : i32, i32, i32
  }
  func.func @transform_2(%arg0: i32, %arg1: i32) -> (i32, i32, i32) {
    %c1_i32 = arith.constant 1 : i32
    %0 = arith.addi %arg1, %c1_i32 : i32
    %c1_i32_0 = arith.constant 1 : i32
    %1 = arith.minsi %0, %c1_i32_0 : i32
    %c0_i32 = arith.constant 0 : i32
    %c0_i32_1 = arith.constant 0 : i32
    return %arg0, %1, %c0_i32 : i32, i32, i32
  }
  func.func @transform_3(%arg0: i32, %arg1: i32) -> (i32, i32, i32) {
    %c0_i32 = arith.constant 0 : i32
    %c0_i32_0 = arith.constant 0 : i32
    %c0_i32_1 = arith.constant 0 : i32
    %c0_i32_2 = arith.constant 0 : i32
    return %c0_i32, %c0_i32_0, %c0_i32_1 : i32, i32, i32
  }
  func.func @transform_4(%arg0: i32, %arg1: i32) -> (i32, i32) {
    %c0_i32 = arith.constant 0 : i32
    %c0_i32_0 = arith.constant 0 : i32
    %c0_i32_1 = arith.constant 0 : i32
    return %c0_i32, %c0_i32_0 : i32, i32
  }
  func.func @transform_5(%arg0: i32, %arg1: i32) -> (i32, i32) {
    %c0_i32 = arith.constant 0 : i32
    %c0_i32_0 = arith.constant 0 : i32
    %c0_i32_1 = arith.constant 0 : i32
    return %c0_i32, %c0_i32_0 : i32, i32
  }
  func.func @transform_6(%arg0: i32, %arg1: i32) -> (i32, i32) {
    %c0_i32 = arith.constant 0 : i32
    %c0_i32_0 = arith.constant 0 : i32
    %c0_i32_1 = arith.constant 0 : i32
    return %c0_i32, %c0_i32_0 : i32, i32
  }
  func.func @transform_7(%arg0: i32, %arg1: i32) -> (i32, i32, i32) {
    %c0_i32 = arith.constant 0 : i32
    %c0_i32_0 = arith.constant 0 : i32
    return %arg0, %arg1, %c0_i32 : i32, i32, i32
  }
}

</mosaic_0001>

<bundles_post_ra>
// kernel: tpu_custom_call.1
= control target key start
LH: loop header
LB: loop body
LE: loop exit
PB: predicated region body
PF: predicated region fallthrough
CT: control target
= control target key end

     0   :  { %7 = vsyncpa [#allocation3], 0  ;;  %s633_s0 = inlined_call_operand.hbm [shape: f32[16,128], index: 0, kind: input, shape index: {}]   ;;  %s634_s1 = inlined_call_operand.hbm [shape: f32[8,128], index: 1, kind: input, shape index: {}]   ;;  %s635_s2 = inlined_call_operand.hbm [shape: f32[16,128], index: 2, kind: output, shape index: {}]  }
   0x1   :  { %9 = vsyncpa [#allocation3 + $0x1], 0 }
   0x2   :  { %10 = vsyncpa [#allocation6], 0 }
   0x3   :  { %11 = vsyncpa [#allocation4], 0 }
   0x4   :  { %13 = vsyncpa [#allocation4 + $0x1], 0  ;;  %s495_s9 = smov 0   ;;  %s497_s10 = smov 0  }
   0x5   :  { %s499_s11 = smov 0   ;;  %s501_s12 = smov 0  }
   0x6 LB: > { %s516_s13 = sadd.s32 4294967295, %s477_s12   ;;  %s276_s14 = sadd.s32 4294967294, %s477_s12   ;;  %s477_s12 = sphi %s501_s12, %s645_s12   ;;  %s473_s11 = sphi %s499_s11, %s644_s11   ;;  %s469_s10 = sphi %s497_s10, %s643_s10   ;;  %s465_s9 = sphi %s495_s9, %s642_s9  }
   0x7   : > { %p39_p0 = scmp.ne.s32.totalorder %s469_s10, %s465_s9  ;;  %p40_p1 = scmp.eq.s32.totalorder %s516_s13, 0 }
   0x8   : > { %p84_p2 = scmp.eq.s32.totalorder %s516_s13, 1  ;;  %p90_p3 = scmp.eq.s32.totalorder %s276_s14, 1 }
   0x9   : > { %p525_p4 = por %p40_p1, %p39_p0  ;;  %p277_p5 = scmp.ge.s32.totalorder %s477_s12, 1 }
   0xa   : > { %p530_p6 = por %p90_p3, %p39_p0  ;;  %p97_p7 = scmp.lt.s32.totalorder %s477_s12, 3 }
   0xb   : > { %s109_s19 = sshll.u32 %s634_s1, 4  ;;  %s479_s21 = smov [#allocation5]   ;;  %s110_s19 = int_to_ptr.hbm [resolvable:$true] %s109_s19 }
   0xc   : > { %p538_p8 = pnand %p277_p5, %p97_p7  ;;  %s111_s22 = sshll.u32 %s479_s21, 4  ;;  %s112_s22 = int_to_ptr.vmem [resolvable:$true] %s111_s22 }
   0xd   : > { %s548_s23 = sadd.s32 1, %s477_s12   ;;  %s26_s24 = sadd.s32 1, %s473_s11 }
   0xe   : > { %p298_p10 = pneg %p538_p8  ;;  %s23_s25 = ssub.s32 %s477_s12, %s548_s23 }
   0xf   : > { %p24_p12 = scmp.eq.s32.totalorder %s23_s25, 0  ;;  %p33_p13 = scmp.ne.s32.totalorder %s473_s11, %s469_s10 }
  0x10   : > { %p299_p11 = pnand %p298_p10, %p40_p1  ;;  %p34_p0 = scmp.eq.s32.totalorder %s477_s12, 0 }
  0x11   : > { %s557_s26 = scalar_select %p24_p12, %s473_s11, %s26_s24  }
  0x12   : > { %301 = dma.hbm_to_vmem [thread:$0]  (!%p299_p11), %s110_s19, 128, %s112_s22, [#allocation6]  }
  0x13   : > { %p561_p3 = por %p84_p2, %p33_p13  ;;  %p311_p5 = scmp.lt.s32.totalorder %s477_s12, 2 }
  0x14   : > { %s122_s28 = sand.u32 1, %s473_s11   ;;  %s281_s29 = sshll.u32 %s477_s12, 3 }
  0x15   : > { %p35_p7 = por %p34_p0, %p33_p13  ;;  %s280_s30 = sshll.u32 %s122_s28, 3 }
  0x16   : > { %s130_s5 = scalar_lea.hbm %s633_s0, %s281_s29  ;;  %s126_s7 = scalar_lea.vmem [#allocation2], %s280_s30 }
  0x17   : > { %s132_s6 = sshll.u32 %s130_s5, 4  ;;  %s134_s8 = sshll.u32 %s126_s7, 4  ;;  %s133_s6 = int_to_ptr.hbm [resolvable:$true] %s132_s6  ;;  %s135_s8 = int_to_ptr.vmem [resolvable:$true] %s134_s8 }
  0x18   : > { %p571_p10 = pnand %p311_p5, %p35_p7  ;;  %s123_s17 = scalar_lea.sflag [#allocation3], %s122_s28 }
  0x19   : > { %s377_s18 = sshra.s32 %s133_s6, 4  ;;  %s384_s24 = scalar_lea.hbm %s633_s0, 16  ;;  %s378_s18 = int_to_ptr.hbm [resolvable:$true] %s377_s18 }
  0x1a   : > { %s379_s19 = scalar_lea.hbm %s378_s18, 8  ;;  %p381_p11 = pneg %p571_p10 }
  0x1b   : > { %p380_p2 = scmp.ne.s32.totalorder %s378_s18, %s379_s19  ;;  %p385_p0 = scmp.lt.s32.totalorder %s378_s18, %s633_s0 }
  0x1c   : > { %p386_p5 = scmp.lt.s32.totalorder %s384_s24, %s379_s19 }
  0x1d   : > { %p382_p12 = pnand %p381_p11, %p380_p2 }
  0x1e   : > { %p387_p7 = por %p386_p5, %p385_p0 }
  0x1f   : > { %p383_p13 = pneg %p382_p12 }
  0x21   : > { %p388_p9 = pnand %p387_p7, %p383_p13 }
  0x23   : > { %391 = shalt.err (!%p388_p9)
}
  0x24   : > { %305 = dma.hbm_to_vmem [thread:$0]  (!%p571_p10), %s133_s6, 128, %s135_s8, %s123_s17  }
  0x25   : > { %143 = sbr.rel (%p538_p8) target bundleno = 60 (0x3c), region = 28  ;;  %s588_s28 = sand.u32 (!%p538_p8), 1, %s469_s10  }
  0x26   : > { %s283_s30 = sshll.u32 (!%p538_p8), %s588_s28, 3  ;;  %s146_s3 = scalar_lea.sflag (!%p538_p8), [#allocation3], %s588_s28 }
  0x27   : > { %s149_s4 = scalar_lea.vmem (!%p538_p8), [#allocation2], %s283_s30 }
  0x2a   : > { %452 = dma.done.wait (%p525_p4), %s146_s3, 128  }
  0x2b   : > { %454 = vsyncadd (%p525_p4), %s146_s3, 4294967168 }
  0x2c   : > { %456 = dma.done.wait (%p40_p1), [#allocation6], 128  }
  0x2d   : > { %458 = vsyncadd (%p40_p1), [#allocation6], 4294967168  ;;  %s287_s20 = sshll.u32 %s516_s13, 3  ;;  %s175_s8 = scalar_lea.vmem [#allocation7], %s283_s30  ;;  %v176_v0 = vld [vmem:[%s149_s4] sm:$0xff]  ;;  %v177_v1 = vld [vmem:[#allocation5] sm:$0xff] }
  0x2e   : > { %s191_s7 = scalar_lea.hbm %s635_s2, %s287_s20  ;;  %s193_s14 = sshll.u32 %s175_s8, 4  ;;  %v178_v2 = vadd.f32 %v177_v1, %v176_v0  ;;  %s194_s14 = int_to_ptr.vmem [resolvable:$true] %s193_s14 }
  0x2f   : > { %s195_s17 = sshll.u32 %s191_s7, 4  ;;  %s181_s15 = scalar_lea.sflag [#allocation4], %s588_s28  ;;  %s196_s17 = int_to_ptr.hbm [resolvable:$true] %s195_s17 }
  0x30   : > { %179 = vst [vmem:[%s175_s8] sm:$0xff] %v178_v2  ;;  %s421_s18 = sshra.s32 %s196_s17, 4  ;;  %s427_s22 = scalar_lea.hbm %s635_s2, 16  ;;  %s422_s18 = int_to_ptr.hbm [resolvable:$true] %s421_s18 }
  0x31   : > { %s423_s19 = scalar_lea.hbm %s422_s18, 8  ;;  %p428_p9 = scmp.lt.s32.totalorder %s422_s18, %s635_s2 }
  0x32   : > { %p424_p1 = scmp.ne.s32.totalorder %s422_s18, %s423_s19  ;;  %p429_p10 = scmp.lt.s32.totalorder %s427_s22, %s423_s19 }
  0x34   : > { %p425_p4 = pnand %p424_p1, %p561_p3  ;;  %p430_p2 = por %p429_p10, %p428_p9 }
  0x36   : > { %p426_p8 = pneg %p425_p4 }
  0x38   : > { %p431_p11 = pnand %p430_p2, %p426_p8 }
  0x3a   : > { %434 = shalt.err (!%p431_p11)
}
  0x3b   : > { %296 = dma.vmem_to_hbm [thread:$0]  (%p561_p3), %s194_s14, 128, %s196_s17, %s181_s15  }
  0x3c PF: > { %s207_s29 = sand.u32 1, %s465_s9   ;;  %p641_p12 = scmp.ge.s32.totalorder %s477_s12, 2 }
  0x3d   : > { %s208_s28 = scalar_lea.sflag [#allocation4], %s207_s29 }
  0x3e   : > { %p307_p13 = pnand %p641_p12, %p530_p6 }
  0x40   : > { %p308_p0 = pneg %p307_p13 }
  0x42   : > { %460 = dma.done.wait (%p308_p0), %s208_s28, 128  }
  0x43   : > { %462 = vsyncadd (%p308_p0), %s208_s28, 4294967168  ;;  %p16_p5 = scmp.ge.s32.totalorder %s548_s23, 4   ;;  %s642_s9 = smov %s469_s10 }
  0x44   : > { %s643_s10 = smov %s473_s11  ;;  %s644_s11 = smov %s557_s26 }
  0x45   : > { %s645_s12 = smov %s548_s23  ;;  %18 = sbr.rel (!%p16_p5) target bundleno = 6 (0x6), region = 77 }
  0x4a   :  { %214 = vsyncpa [#allocation3], 1 }
  0x4b   :  { %216 = vsyncpa [#allocation3 + $0x1], 1 }
  0x4c   :  { %217 = vsyncpa [#allocation6], 1 }
  0x4d   :  { %218 = vsyncpa [#allocation4], 1 }
  0x4e   :  { %220 = vsyncpa [#allocation4 + $0x1], 1 }

// kernel: tpu_custom_call.1
= control target key start
LH: loop header
LB: loop body
LE: loop exit
PB: predicated region body
PF: predicated region fallthrough
CT: control target
= control target key end

     0   :  { %12 = vsyncpa [#allocation3], 0  ;;  %s3065_s0 = inlined_call_operand.vmem [shape: f32[2,128,128], index: 0, kind: input, shape index: {}]   ;;  %s3066_s1 = inlined_call_operand.vmem [shape: f32[2,128,128], index: 1, kind: input, shape index: {}]   ;;  %s3067_s2 = inlined_call_operand.vmem [shape: f32[2,128,128], index: 2, kind: input, shape index: {}]   ;;  %s3068_s3 = inlined_call_operand.vmem [shape: f32[2,320,64], index: 3, kind: input, shape index: {}]   ;;  %s3069_s4 = inlined_call_operand.vmem [shape: f32[1,128], index: 4, kind: input, shape index: {}]   ;;  %s3070_s5 = inlined_call_operand.vmem [shape: f32[1,128], index: 5, kind: input, shape index: {}]   ;;  %s3071_s6 = inlined_call_operand.vmem [shape: f32[1,128], index: 6, kind: input, shape index: {}]   ;;  %s3072_s7 = inlined_call_operand.hbm [shape: f32[2,128,128], index: 7, kind: output, shape index: {}]  }
   0x1   :  { %14 = vsyncpa [#allocation3 + $0x1], 0  ;;  %s2039_s24 = smov 0   ;;  %s2041_s25 = smov 0  }
   0x2   :  { %s2043_s26 = smov 0   ;;  %s2045_s27 = smov 0  }
   0x3   :  { %s2047_s28 = smov 0   ;;  %s2049_s29 = smov 0  }
   0x4   :  { %s2051_s5 = smov 0   ;;  %s2053_s6 = smov 0  }
   0x5 LB: > { %3077 = sst [smem:[#allocation5_spill]] %s1985_s29  ;;  %s1606_s30 = sadd.s32 4294967295, %s1993_s6   ;;  %s1993_s6 = sphi %s2053_s6, %s20_s6   ;;  %s1989_s5 = sphi %s2051_s5, %s3088_s5   ;;  %s1985_s29 = sphi %s2049_s29, %s3087_s29   ;;  %s1981_s28 = sphi %s2047_s28, %s3086_s28   ;;  %s1977_s27 = sphi %s2045_s27, %s3085_s27   ;;  %s1973_s26 = sphi %s2043_s26, %s3091_s26   ;;  %s1969_s25 = sphi %s2041_s25, %s3090_s25   ;;  %s1965_s24 = sphi %s2039_s24, %s3089_s24  }
   0x6   : > { %3078 = sst [smem:[#allocation6_spill]] %s1989_s5  ;;  %s1607_s8 = sadd.s32 4294967294, %s1993_s6  }
   0x7   : > { %s29_s9 = sadd.s32 1, %s1985_s29  ;;  %s32_s10 = sadd.s32 1, %s1989_s5 }
   0x8   : > { %p30_p0 = scmp.ge.s32.totalorder %s29_s9, 2  ;;  %p231_p1 = scmp.ne.s32.totalorder %s1973_s26, %s1969_s25 }
   0x9   : > { %p232_p2 = scmp.eq.s32.totalorder %s1606_s30, 3  ;;  %p237_p5 = scmp.ne.s32.totalorder %s1969_s25, %s1965_s24 }
   0xa   : > { %s3093_s9 = smov (%p30_p0, %s29_s9), 0  ;;  %s3095_s10 = smov (!%p30_p0, %s32_s10), %s1989_s5 }
   0xb   : > { %3079 = sst [smem:[#allocation7_spill]] %s3093_s9  ;;  %s217_s11 = ssub.s32 %s1985_s29, %s3093_s9 }
   0xc   : > { %p2090_p3 = por %p232_p2, %p231_p1  ;;  %p34_p4 = scmp.ge.s32.totalorder %s3095_s10, 2 }
   0xd   : > { %p238_p6 = scmp.eq.s32.totalorder %s1607_s8, 3  ;;  %p1612_p7 = scmp.ge.s32.totalorder %s1993_s6, 1 }
   0xe   : > { %s3097_s10 = smov (%p34_p4, %s3095_s10), 0  ;;  %p319_p9 = scmp.lt.s32.totalorder %s1993_s6, 5 }
   0xf   : > { %3081 = sst [smem:[#allocation8_spill]] %s3097_s10  ;;  %p2099_p8 = por %p238_p6, %p237_p5 }
  0x10   : > { %s216_s14 = ssub.s32 %s1989_s5, %s3097_s10  ;;  %s221_s15 = sadd.s32 1, %s1973_s26 }
  0x11   : > { %s218_s16 = sor.u32 %s217_s11, %s216_s14  ;;  %p320_p10 = pnand %p1612_p7, %p319_p9 }
  0x12   : > { %p219_p11 = scmp.eq.s32.totalorder %s218_s16, 0  ;;  %s1614_s18 = sadd.s32 (!%p320_p10), 4294967295, %s1977_s27 }
  0x13   : > { %323 = sbr.rel (%p320_p10) target bundleno = 555 (0x22b), region = 48  ;;  %p383_p12 = scmp.lt.s32.totalorder (!%p320_p10), %s1981_s28, 1 }
  0x14   : > { %s2108_s17 = scalar_select %p219_p11, %s1973_s26, %s221_s15  }
  0x15   : > { %p380_p13 = scmp.gt.s32.totalorder (!%p320_p10), %s1614_s18, 0  ;;  %s2113_s19 = sshll.u32 (!%p320_p10), %s1977_s27, 3 }
  0x16   : > { %p398_p0 = scmp.lt.s32.totalorder (!%p320_p10), %s2113_s19, 15  ;;  %s405_s23 = sadd.s32 (!%p320_p10), 1, %s1977_s27 }
  0x17   : > { %p2120_p2 = scmp.lt.s32.totalorder (!%p320_p10), %s405_s23, 1  ;;  %p431_p4 = scmp.eq.s32.totalorder (!%p320_p10), %s1977_s27, 0 }
  0x18   : > { %s384_s20 = scalar_select %p383_p12, %s1981_s28, 1  ;;  %vm450_vm0 = vcmask 1041408   ;;  %vm524_vm1 = vcmask 1045504   ;;  %vm482_vm2 = vcmask 1046528   ;;  %vm592_vm5 = vcmask 1043456  }
  0x19   : > { %s3099_s18 = smov (!%p380_p13, %s1614_s18), 0  ;;  %s3103_s23 = smov (!%p2120_p2, %s405_s23), 1  ;;  %vm550_vm6 = vcmask 1044480   ;;  %vm610_vm7 = vcmask 523264  }
  0x1a   : > { %s2116_s21 = sshll.u32 %s384_s20, 4  ;;  %s1615_s22 = sshll.u32 %s3099_s18, 3 }
  0x1b   : > { %p385_p1 = scmp.lt.s32.totalorder %s1615_s22, 15  ;;  %s1621_s5 = sshll.u32 %s3103_s23, 3 }
  0x1c   : > { %s399_s8 = scalar_select %p398_p0, %s2113_s19, 15 }
  0x1d   : > { %s3101_s22 = smov (!%p385_p1, %s1615_s22), 15  ;;  %p2154_p5 = scmp.lt.s32.totalorder %s1621_s5, 15 }
  0x1e   : > { %s401_s11 = sadd.s32 %s2116_s21, %s399_s8  ;;  %s388_s14 = sadd.s32 %s2116_s21, %s3101_s22 }
  0x1f   : > { %s1620_s15 = sshll.u32 %s401_s11, 3  ;;  %s1617_s16 = sshll.u32 %s388_s14, 3 }
  0x20   : > { %s2131_s9 = scalar_lea.vmem %s3066_s1, %s1620_s15  ;;  %s390_s29 = scalar_lea.vmem %s3065_s0, %s1617_s16 }
  0x21   : > { %v422_v0 = vld [vmem:[%s2131_s9] sm:$0xff]  ;;  %v423_v1 = vld [vmem:[%s2131_s9 + $0x8] sm:$0xff]  ;;  %v424_v2 = vld [vmem:[%s2131_s9 + $0x10] sm:$0xff]  ;;  %s432_s10 = scalar_select %p431_p4, 1, 0 }
  0x22   : > { %v451_v3 = vrot.slane %v422_v0, 6  ;;  %v452_v4 = vrot.slane %v423_v1, 6  ;;  %v454_v5 = vrot.slane %v424_v2, 6  ;;  %v425_v6 = vld [vmem:[%s2131_s9 + $0x18] sm:$0xff]  ;;  %v426_v7 = vld [vmem:[%s2131_s9 + $0x20] sm:$0xff]  ;;  %v427_v17 = vld [vmem:[%s2131_s9 + $0x28] sm:$0xff] }
  0x23   : > { %v430_v8 = vld [vmem:[%s390_s29 + $0x3e] sm:$0x3]  ;;  %v456_v11 = vrot.slane %v425_v6, 6  ;;  %v458_v12 = vrot.slane %v426_v7, 6  ;;  %v433_v13 = vstv %s432_s10  ;;  %v428_v21 = vld [vmem:[%s2131_s9 + $0x30] sm:$0xff]  ;;  %v460_v27 = vrot.slane %v427_v17, 6 }
  0x24   : > { %v2149_v9 = vsel %vm450_vm0, %v451_v3, %v452_v4  ;;  %v2152_v10 = vsel %vm450_vm0, %v452_v4, %v454_v5  ;;  %vm434_vm3 = vcmp.eq.s32.totalorder %v433_v13, 1  ;;  %s3105_s5 = smov (!%p2154_p5, %s1621_s5), 15  ;;  %v462_v31 = vrot.slane %v428_v21, 6  ;;  %s1995_s29 = smov 64   ;;  %v429_v45 = vld [vmem:[%s2131_s9 + $0x38] sm:$0xff] }
  0x25   : > { %v526_v14 = vrot.slane %v2149_v9, 2  ;;  %v528_v15 = vrot.slane %v2152_v10, 2  ;;  %v484_v16 = vrot.slane %v2149_v9, 1  ;;  %v486_v18 = vrot.slane %v2152_v10, 1  ;;  %p437_p6 = scmp.eq.s32.totalorder %s1977_s27, 1  ;;  %s414_s23 = sadd.s32 %s2116_s21, %s3105_s5 }
  0x26   : > { %v2164_v19 = vsel %vm450_vm0, %v454_v5, %v456_v11  ;;  %v2167_v20 = vsel %vm450_vm0, %v456_v11, %v458_v12  ;;  %v435_v22 = vsel %vm434_vm3, 0.0, %v430_v8  ;;  %v2187_v32 = vsel %vm450_vm0, %v458_v12, %v460_v27  ;;  %s1623_s21 = sshll.u32 %s414_s23, 3  ;;  %s1919_s22 = scalar_lea.hbm %s3072_s7, 256 }
  0x27   : > { %v2171_v23 = vsel %vm524_vm1, %v526_v14, %v528_v15  ;;  %v2174_v24 = vsel %vm450_vm0, %v435_v22, %v451_v3  ;;  %v488_v25 = vrot.slane %v2164_v19, 1  ;;  %v490_v26 = vrot.slane %v2167_v20, 1  ;;  %s438_s27 = scalar_select %p437_p6, 1, 0 }
  0x28   : > { %v1803_v28 = vpack.i.bf16 %v2171_v23, %v2174_v24  ;;  %v483_v29 = vrot.slane %v2174_v24, 1  ;;  %v2184_v30 = vsel %vm482_vm2, %v484_v16, %v486_v18  ;;  %v525_v34 = vrot.slane %v2174_v24, 2  ;;  %s416_s11 = scalar_lea.vmem %s3067_s2, %s1623_s21  ;;  %s1682_s21 = sshll.u32 %s1981_s28, 4 }
  0x29   : > { %v2198_v36 = vsel %vm482_vm2, %v488_v25, %v490_v26  ;;  %v2202_v37 = vsel %vm450_vm0, %v460_v27, %v462_v31  ;;  %v492_v38 = vrot.slane %v2187_v32, 1  ;;  %v2207_v39 = vsel %vm482_vm2, %v486_v18, %v488_v25  ;;  %v436_v54 = vld [vmem:[%s416_s11] sm:$0x3]  ;;  %s1482_s30 = sadd.s32 %s1682_s21, %s2113_s19 }
  0x2a   : > { %1804 = vrot.lane.b32.xlu1 %v1803_v28, %s1995_s29  ;;  %v2191_v33 = vsel %vm482_vm2, %v483_v29, %v484_v16  ;;  %v1808_v40 = vpack.i.bf16 %v2149_v9, %v2198_v36  ;;  %v2212_v41 = vsel %vm524_vm1, %v525_v34, %v526_v14  ;;  %v530_v43 = vrot.slane %v2164_v19, 2  ;;  %v665_v16 = vld [vmem:[%s3068_s3 + $0x130] sm:$0xff]  ;;  %s1683_s8 = sshll.u32 %s1482_s30, 3 }
  0x2b   : > { %v1793_v35 = vpack.i.bf16 %v2184_v30, %v2191_v33  ;;  %v2215_v42 = vsel %vm482_vm2, %v490_v26, %v492_v38  ;;  %v494_v44 = vrot.slane %v2202_v37, 1  ;;  %v1798_v47 = vpack.i.bf16 %v2207_v39, %v2212_v41  ;;  %s1484_s19 = scalar_lea.hbm %s3072_s7, %s1683_s8 }
  0x2c   : > { %v2221_v46 = vsel %vm524_vm1, %v528_v15, %v530_v43  ;;  %v532_v49 = vrot.slane %v2167_v20, 2  ;;  %v439_v50 = vstv %s438_s27  ;;  %v464_v52 = vrot.slane %v429_v45, 6  ;;  %v666_v15 = vld [vmem:[%s3068_s3 + $0x138] sm:$0xff]  ;;  %s1487_s14 = sshll.u32 %s1484_s19, 4  ;;  %s1488_s14 = int_to_ptr.hbm [resolvable:$true] %s1487_s14 }
  0x2d   : > { %1794 = vrot.lane.b32.xlu0 %v1793_v35, %s1995_s29  ;;  %v1813_v48 = vpack.i.bf16 %v2215_v42, %v2221_v46  ;;  %v2233_v51 = vsel %vm482_vm2, %v492_v38, %v494_v44  ;;  %vm440_vm4 = vcmp.eq.s32.totalorder %v439_v50, 1  ;;  %v593_v56 = vrot.slane %v2174_v24, 4  ;;  %773 = vmatpush.msra.mxu2 %v666_v15  ;;  %v664_v35 = vld [vmem:[%s3068_s3 + $0x128] sm:$0xff]  ;;  %v663_v38 = vld [vmem:[%s3068_s3 + $0x120] sm:$0xff]  ;;  %s1913_s20 = sshra.s32 %s1488_s14, 4  ;;  %s1914_s20 = int_to_ptr.hbm [resolvable:$true] %s1913_s20 }
  0x2e   : > { %v2237_v53 = vsel %vm524_vm1, %v530_v43, %v532_v49  ;;  %v1823_v55 = vpack.i.bf16 %v2164_v19, %v2233_v51  ;;  %v594_v57 = vrot.slane %v2149_v9, 4  ;;  %v2245_v58 = vsel %vm450_vm0, %v462_v31, %v464_v52  ;;  %1702 = vmatpush.msra.mxu3 %v666_v15  ;;  %s1915_s18 = scalar_lea.hbm %s1914_s20, 64  ;;  %p1920_p11 = scmp.lt.s32.totalorder %s1914_s20, %s3072_s7 }
  0x2f   : > { %1814 = vrot.lane.b32.xlu2 %v1813_v48, %s1995_s29  ;;  %v536_v59 = vrot.slane %v2202_v37, 2  ;;  %v1818_v60 = vpack.i.bf16 %v2237_v53, %v2152_v10  ;;  %v441_v61 = vsel %vm440_vm4, 0.0, %v436_v54  ;;  %v534_v62 = vrot.slane %v2187_v32, 2  ;;  %774 = vmatpush.msra.mxu2 %v665_v16  ;;  %v662_v48 = vld [vmem:[%s3068_s3 + $0x118] sm:$0xff]  ;;  %v640_v54 = vld [vmem:[%s3068_s3 + $0x68] sm:$0xff]  ;;  %p1916_p7 = scmp.ne.s32.totalorder %s1914_s20, %s1915_s18  ;;  %p1921_p12 = scmp.lt.s32.totalorder %s1919_s22, %s1915_s18 }
  0x30   : > { %v2253_v63 = vsel %vm592_vm5, %v593_v56, %v594_v57  ;;  %v496_v0 = vrot.slane %v2245_v58, 1  ;;  %v476_v1 = vrot.slane %v441_v61, 6  ;;  %v596_v3 = vrot.slane %v2152_v10, 4  ;;  %1703 = vmatpush.msra.mxu3 %v665_v16  ;;  %v659_v61 = vld [vmem:[%s3068_s3 + $0x100] sm:$0xff]  ;;  %v1662_v16 = vld [vmem:[%s3068_s3 + $0x230] sm:$0xff] }
  0x31   : > { %v2257_v2 = vsel %vm524_vm1, %v534_v62, %v536_v59  ;;  %v2267_v5 = vsel %vm524_vm1, %v532_v49, %v534_v62  ;;  %v598_v13 = vrot.slane %v2164_v19, 4  ;;  %v600_v14 = vrot.slane %v2167_v20, 4  ;;  %775 = vmatpush.msra.mxu2 %v664_v35  ;;  %v638_v62 = vld [vmem:[%s3068_s3 + $0x58] sm:$0xff]  ;;  %p1917_p9 = pnand %p1916_p7, %p2090_p3  ;;  %p1922_p13 = por %p1921_p12, %p1920_p11 }
  0x32   : > { %1809 = vrot.lane.b32.xlu1 %v1808_v40, %s1995_s29  ;;  %v2264_v4 = vsel %vm482_vm2, %v494_v44, %v496_v0  ;;  %v1833_v6 = vpack.i.bf16 %v2257_v2, %v2167_v20  ;;  %v2272_v7 = vsel %vm450_vm0, %v464_v52, %v476_v1  ;;  %v2275_v8 = vsel %vm592_vm5, %v594_v57, %v596_v3  ;;  %v642_v40 = vld [vmem:[%s3068_s3 + $0x78] sm:$0xff]  ;;  %v641_v44 = vld [vmem:[%s3068_s3 + $0x70] sm:$0xff]  ;;  %v660_v57 = vld [vmem:[%s3068_s3 + $0x108] sm:$0xff] }
  0x33   : > { %v1828_v11 = vpack.i.bf16 %v2264_v4, %v2267_v5  ;;  %v498_v12 = vrot.slane %v2272_v7, 1  ;;  %v2296_v18 = vsel %vm592_vm5, %v598_v13, %v600_v14  ;;  %v2299_v21 = vsel %vm592_vm5, %v596_v3, %v598_v13  ;;  %1704 = vmatpush.msra.mxu3 %v664_v35  ;;  %683 = vmatpush.msra.mxu0 %v642_v40  ;;  %v661_v52 = vld [vmem:[%s3068_s3 + $0x110] sm:$0xff]  ;;  %v1660_v35 = vld [vmem:[%s3068_s3 + $0x220] sm:$0xff]  ;;  %p1918_p10 = pneg %p1917_p9 }
  0x34   : > { %v551_v22 = vrot.slane %v2174_v24, 3  ;;  %v552_v25 = vrot.slane %v2149_v9, 3  ;;  %v538_v27 = vrot.slane %v2245_v58, 2  ;;  %v540_v28 = vrot.slane %v2272_v7, 2  ;;  %1686 = vmatpush.msra.mxu1 %v642_v40  ;;  %776 = vmatpush.msra.mxu2 %v663_v38  ;;  %v634_v40 = vld [vmem:[%s3068_s3 + $0x38] sm:$0xff] }
  0x35   : > { %1799 = vrot.lane.b32.xlu0 %v1798_v47, %s1995_s29  ;;  %v2293_v17 = vsel %vm482_vm2, %v496_v0, %v498_v12  ;;  %v602_v29 = vrot.slane %v2187_v32, 4  ;;  %v554_v49 = vrot.slane %v2152_v10, 3  ;;  %1705 = vmatpush.msra.mxu3 %v663_v38  ;;  %v608_v56 = vrot.slane %v2272_v7, 4  ;;  %v637_v12 = vld [vmem:[%s3068_s3 + $0x50] sm:$0xff]  ;;  %p1923_p0 = pnand %p1922_p13, %p1918_p10 }
  0x36   : > { %v1838_v26 = vpack.i.bf16 %v2187_v32, %v2293_v17  ;;  %v2313_v31 = vsel %vm524_vm1, %v536_v59, %v538_v27  ;;  %v2316_v34 = vsel %vm550_vm6, %v551_v22, %v552_v25  ;;  %v2329_v43 = vsel %vm524_vm1, %v538_v27, %v540_v28  ;;  %684 = vmatpush.msra.mxu0 %v641_v44  ;;  %v639_v59 = vld [vmem:[%s3068_s3 + $0x60] sm:$0xff]  ;;  %v636_v22 = vld [vmem:[%s3068_s3 + $0x48] sm:$0xff] }
  0x37   : > { %1819 = vrot.lane.b32.xlu2 %v1818_v60, %s1995_s29  ;;  %v603_v45 = vsel %vm592_vm5, %v600_v14, %v602_v29  ;;  %v1843_v47 = vpack.i.bf16 %v2316_v34, %v2313_v31  ;;  %v1848_v50 = vpack.i.bf16 %v2329_v43, %v2202_v37  ;;  %1687 = vmatpush.msra.mxu1 %v641_v44  ;;  %v604_v0 = vrot.slane %v2202_v37, 4  ;;  %v1646_v14 = vld [vmem:[%s3068_s3 + $0x1b0] sm:$0xff]  ;;  %v635_v27 = vld [vmem:[%s3068_s3 + $0x40] sm:$0xff] }
  0x38   : > { %777 = vmatpush.msra.mxu2 %v662_v48  ;;  %1706 = vmatpush.msra.mxu3 %v662_v48  ;;  %v2362_v60 = vsel %vm550_vm6, %v552_v25, %v554_v49  ;;  %v558_v15 = vrot.slane %v2167_v20, 3  ;;  %v1645_v25 = vld [vmem:[%s3068_s3 + $0x1a8] sm:$0xff]  ;;  %v1644_v28 = vld [vmem:[%s3068_s3 + $0x1a0] sm:$0xff]  ;;  %v633_v48 = vld [vmem:[%s3068_s3 + $0x30] sm:$0xff] }
  0x39   : > { %685 = vmatpush.msra.mxu0 %v640_v54  ;;  %v1853_v3 = vpack.i.bf16 %v2245_v58, %v2362_v60  ;;  %1688 = vmatpush.msra.mxu1 %v640_v54  ;;  %v605_v13 = vsel %vm592_vm5, %v602_v29, %v604_v0  ;;  %v560_v54 = vrot.slane %v2187_v32, 3 }
  0x3a   : > { %1824 = vrot.lane.b32.xlu1 %v1823_v55, %s1995_s29  ;;  %v606_v55 = vrot.slane %v2245_v58, 4  ;;  %778 = vmatpush.msra.mxu2 %v661_v52 }
  0x3b   : > { %1707 = vmatpush.msra.mxu3 %v661_v52  ;;  %686 = vmatpush.msra.mxu0 %v639_v59  ;;  %v1658_v52 = vld [vmem:[%s3068_s3 + $0x210] sm:$0xff] }
  0x3c   : > { %779 = vmatpush.msra.mxu2 %v660_v57  ;;  %v2373_v1 = vsel %vm592_vm5, %v606_v55, %v608_v56  ;;  %1689 = vmatpush.msra.mxu1 %v639_v59  ;;  %v607_v44 = vsel %vm592_vm5, %v604_v0, %v606_v55  ;;  %v632_v55 = vld [vmem:[%s3068_s3 + $0x28] sm:$0xff]  ;;  %v1640_v0 = vld [vmem:[%s3068_s3 + $0x180] sm:$0xff] }
  0x3d   : > { %870 = vrot.lane.b32.xlu0 %v2253_v63, %s1995_s29  ;;  %1708 = vmatpush.msra.mxu3 %v660_v57  ;;  %v1641_v56 = vld [vmem:[%s3068_s3 + $0x188] sm:$0xff] }
  0x3e   : > { %780 = vmatpush.msra.mxu2 %v659_v61  ;;  %687 = vmatpush.msra.mxu0 %v638_v62  ;;  %v1657_v59 = vld [vmem:[%s3068_s3 + $0x208] sm:$0xff] }
  0x3f   : > { %872 = vrot.lane.b32.xlu2 %v2275_v8, %s1995_s29  ;;  %1709 = vmatpush.msra.mxu3 %v659_v61  ;;  %v2473_v61 = vsel %vm550_vm6, %v558_v15, %v560_v54 }
  0x40   : > { %1624 = vmatmul.msk.f32.vlgmr.msra.gmra.mxu2 %vm610_vm7, %v2253_v63  ;;  %1628 = vmatmul.msk.f32.vlgmr.msra.gmra.mxu3 %vm610_vm7, %v603_v45  ;;  %v556_v63 = vrot.slane %v2164_v19, 3 }
  0x41   : > { %688 = vmatpush.msra.mxu0 %v637_v12  ;;  %1690 = vmatpush.msra.mxu1 %v638_v62  ;;  %v631_v62 = vld [vmem:[%s3068_s3 + $0x20] sm:$0xff] }
  0x42   : > { %1834 = vrot.lane.b32.xlu1 %v1833_v6, %s1995_s29  ;;  %v1647_v6 = vld [vmem:[%s3068_s3 + $0x1b8] sm:$0xff]  ;;  %v2418_v29 = vsel %vm550_vm6, %v556_v63, %v558_v15  ;;  %v2426_v38 = vsel %vm550_vm6, %v554_v49, %v556_v63  ;;  %v1642_v49 = vld [vmem:[%s3068_s3 + $0x190] sm:$0xff] }
  0x43   : > { %959 = vmatpush.msrb.mxu3 %v1647_v6  ;;  %689 = vmatpush.msra.mxu0 %v636_v22  ;;  %v1656_v6 = vld [vmem:[%s3068_s3 + $0x200] sm:$0xff]  ;;  %v1638_v63 = vld [vmem:[%s3068_s3 + $0x170] sm:$0xff] }
  0x44   : > { %1691 = vmatpush.msra.mxu1 %v637_v12  ;;  %v1639_v12 = vld [vmem:[%s3068_s3 + $0x178] sm:$0xff]  ;;  %v1654_v15 = vld [vmem:[%s3068_s3 + $0x1f0] sm:$0xff] }
  0x45   : > { %1829 = vrot.lane.b32.xlu0 %v1828_v11, %s1995_s29  ;;  %v1663_v11 = vld [vmem:[%s3068_s3 + $0x238] sm:$0xff]  ;;  %960 = vmatpush.msrb.mxu3 %v1646_v14  ;;  %v629_v14 = vld [vmem:[%s3068_s3 + $0x10] sm:$0xff] }
  0x46   : > { %1000 = vmatpush.msrb.mxu2 %v1663_v11  ;;  %690 = vmatpush.msra.mxu0 %v635_v27  ;;  %v630_v11 = vld [vmem:[%s3068_s3 + $0x18] sm:$0xff] }
  0x47   : > { %874 = vrot.lane.b32.xlu2 %v2299_v21, %s1995_s29  ;;  %961 = vmatpush.msrb.mxu3 %v1645_v25  ;;  %v1652_v25 = vld [vmem:[%s3068_s3 + $0x1e0] sm:$0xff] }
  0x48   : > { %1001 = vmatpush.msrb.mxu2 %v1662_v16  ;;  %1629 = vmatmul.msk.f32.gmra.mxu3 %vm610_vm7, %v605_v13  ;;  %v1637_v16 = vld [vmem:[%s3068_s3 + $0x168] sm:$0xff] }
  0x49   : > { %962 = vmatpush.msrb.mxu3 %v1644_v28  ;;  %1625 = vmatmul.msk.f32.gmra.mxu2 %vm610_vm7, %v2275_v8  ;;  %v1659_v8 = vld [vmem:[%s3068_s3 + $0x218] sm:$0xff] }
  0x4a   : > { %876 = vrot.lane.b32.xlu1 %v2296_v18, %s1995_s29  ;;  %691 = vmatpush.msra.mxu0 %v634_v40  ;;  %v1651_v28 = vld [vmem:[%s3068_s3 + $0x1d8] sm:$0xff] }
  0x4b   : > { %1692 = vmatpush.msra.mxu1 %v636_v22  ;;  %v1653_v22 = vld [vmem:[%s3068_s3 + $0x1e8] sm:$0xff] }
  0x4c   : > { %692 = vmatpush.msra.mxu0 %v633_v48 }
  0x4d   : > { %1839 = vrot.lane.b32.xlu0 %v1838_v26, %s1995_s29  ;;  %v1661_v26 = vld [vmem:[%s3068_s3 + $0x228] sm:$0xff]  ;;  %1693 = vmatpush.msra.mxu1 %v635_v27  ;;  %v1635_v27 = vld [vmem:[%s3068_s3 + $0x158] sm:$0xff] }
  0x4e   : > { %1002 = vmatpush.msrb.mxu2 %v1661_v26  ;;  %693 = vmatpush.msra.mxu0 %v632_v55  ;;  %v1671_v26 = vld [vmem:[%s3068_s3 + $0x278] sm:$0xff] }
  0x4f   : > { %1844 = vrot.lane.b32.xlu2 %v1843_v47, %s1995_s29  ;;  %v564_v47 = vrot.slane %v2245_v58, 3  ;;  %1694 = vmatpush.msra.mxu1 %v634_v40  ;;  %v1650_v40 = vld [vmem:[%s3068_s3 + $0x1d0] sm:$0xff] }
  0x50   : > { %1003 = vmatpush.msrb.mxu2 %v1660_v35  ;;  %694 = vmatpush.msra.mxu0 %v631_v62  ;;  %v1634_v35 = vld [vmem:[%s3068_s3 + $0x150] sm:$0xff] }
  0x51   : > { %1626 = vmatmul.msk.f32.gmra.mxu2 %vm610_vm7, %v2299_v21  ;;  %1630 = vmatmul.msk.f32.gmra.mxu3 %vm610_vm7, %v607_v44  ;;  %v628_v21 = vld [vmem:[%s3068_s3 + $0x8] sm:$0xff] }
  0x52   : > { %878 = vrot.lane.b32.xlu1 %v603_v45, %s1995_s29  ;;  %v1643_v45 = vld [vmem:[%s3068_s3 + $0x198] sm:$0xff]  ;;  %1004 = vmatpush.msrb.mxu2 %v1659_v8 }
  0x53   : > { %963 = vmatpush.msrb.mxu3 %v1643_v45  ;;  %695 = vmatpush.msra.mxu0 %v630_v11  ;;  %v566_v45 = vrot.slane %v2272_v7, 3  ;;  %v1649_v7 = vld [vmem:[%s3068_s3 + $0x1c8] sm:$0xff] }
  0x54   : > { %1005 = vmatpush.msrb.mxu2 %v1658_v52  ;;  %1695 = vmatpush.msra.mxu1 %v633_v48  ;;  %v1633_v48 = vld [vmem:[%s3068_s3 + $0x148] sm:$0xff]  ;;  %v658_v52 = vld [vmem:[%s3068_s3 + $0xf8] sm:$0xff] }
  0x55   : > { %1849 = vrot.lane.b32.xlu0 %v1848_v50, %s1995_s29  ;;  %v562_v50 = vrot.slane %v2202_v37, 3  ;;  %964 = vmatpush.msrb.mxu3 %v1642_v49  ;;  %v2558_v8 = vsel %vm550_vm6, %v564_v47, %v566_v45  ;;  %v1632_v49 = vld [vmem:[%s3068_s3 + $0x140] sm:$0xff]  ;;  %v646_v45 = vld [vmem:[%s3068_s3 + $0x98] sm:$0xff] }
  0x56   : > { %1006 = vmatpush.msrb.mxu2 %v1657_v59  ;;  %696 = vmatpush.msra.mxu0 %v629_v14 }
  0x57   : > { %1854 = vrot.lane.b32.xlu2 %v1853_v3, %s1995_s29  ;;  %v2467_v57 = vsel %vm550_vm6, %v562_v50, %v564_v47  ;;  %965 = vmatpush.msrb.mxu3 %v1641_v56  ;;  %v2482_v3 = vsel %vm550_vm6, %v560_v54, %v562_v50  ;;  %v1648_v47 = vld [vmem:[%s3068_s3 + $0x1c0] sm:$0xff]  ;;  %v1669_v50 = vld [vmem:[%s3068_s3 + $0x268] sm:$0xff]  ;;  %v657_v54 = vld [vmem:[%s3068_s3 + $0xf0] sm:$0xff] }
  0x58   : > { %1007 = vmatpush.msrb.mxu2 %v1656_v6  ;;  %1696 = vmatpush.msra.mxu1 %v632_v55  ;;  %v1668_v55 = vld [vmem:[%s3068_s3 + $0x260] sm:$0xff] }
  0x59   : > { %966 = vmatpush.msrb.mxu3 %v1640_v0  ;;  %1627 = vmatmul.msk.f32.gmra.mxu2 %vm610_vm7, %v2296_v18  ;;  %v627_v18 = vld [vmem:[%s3068_s3] sm:$0xff] }
  0x5a   : > { %884 = vrot.lane.b32.xlu1 %v2373_v1, %s1995_s29  ;;  %1697 = vmatpush.msra.mxu1 %v631_v62  ;;  %v656_v62 = vld [vmem:[%s3068_s3 + $0xe8] sm:$0xff]  ;;  %v655_v0 = vld [vmem:[%s3068_s3 + $0xe0] sm:$0xff] }
  0x5b   : > { %967 = vmatpush.msrb.mxu3 %v1639_v12  ;;  %697 = vmatpush.msra.mxu0 %v628_v21  ;;  %v654_v12 = vld [vmem:[%s3068_s3 + $0xd8] sm:$0xff] }
  0x5c   : > { %1631 = vmatmul.msk.f32.gmra.mxu3 %vm610_vm7, %v2373_v1  ;;  %1698 = vmatpush.msra.mxu1 %v630_v11  ;;  %v1636_v1 = vld [vmem:[%s3068_s3 + $0x160] sm:$0xff]  ;;  %v1667_v11 = vld [vmem:[%s3068_s3 + $0x258] sm:$0xff] }
  0x5d   : > { %880 = vrot.lane.b32.xlu0 %v605_v13, %s1995_s29  ;;  %v1655_v13 = vld [vmem:[%s3068_s3 + $0x1f8] sm:$0xff]  ;;  %968 = vmatpush.msrb.mxu3 %v1638_v63  ;;  %v651_v63 = vld [vmem:[%s3068_s3 + $0xc0] sm:$0xff] }
  0x5e   : > { %1008 = vmatpush.msrb.mxu2 %v1655_v13  ;;  %1699 = vmatpush.msra.mxu1 %v629_v14  ;;  %v653_v13 = vld [vmem:[%s3068_s3 + $0xd0] sm:$0xff]  ;;  %v652_v14 = vld [vmem:[%s3068_s3 + $0xc8] sm:$0xff] }
  0x5f   : > { %572 = vrot.lane.b32.xlu2 %v2426_v38, %s1995_s29  ;;  %969 = vmatpush.msrb.mxu3 %v1637_v16  ;;  %v650_v16 = vld [vmem:[%s3068_s3 + $0xb8] sm:$0xff] }
  0x60   : > { %1009 = vmatpush.msrb.mxu2 %v1654_v15  ;;  %1700 = vmatpush.msra.mxu1 %v628_v21  ;;  %v1665_v21 = vld [vmem:[%s3068_s3 + $0x248] sm:$0xff] }
  0x61   : > { %698 = vmatpush.msra.mxu0 %v627_v18  ;;  %970 = vmatpush.msrb.mxu3 %v1636_v1  ;;  %v1664_v1 = vld [vmem:[%s3068_s3 + $0x240] sm:$0xff] }
  0x62   : > { %574 = vrot.lane.b32.xlu1 %v2418_v29, %s1995_s29  ;;  %1010 = vmatpush.msrb.mxu2 %v1653_v22  ;;  %v649_v22 = vld [vmem:[%s3068_s3 + $0xb0] sm:$0xff] }
  0x63   : > { %1701 = vmatpush.msra.mxu1 %v627_v18  ;;  %1049 = vmatpush.msrb.mxu0 %v1671_v26 }
  0x64   : > { %1011 = vmatpush.msrb.mxu2 %v1652_v25  ;;  %971 = vmatpush.msrb.mxu3 %v1635_v27 }
  0x65   : > { %882 = vrot.lane.b32.xlu0 %v607_v44, %s1995_s29  ;;  %v1670_v44 = vld [vmem:[%s3068_s3 + $0x270] sm:$0xff]  ;;  %724 = vmatpush.msrb.mxu1 %v658_v52 }
  0x66   : > { %1012 = vmatpush.msrb.mxu2 %v1651_v28  ;;  %972 = vmatpush.msrb.mxu3 %v1634_v35  ;;  %v648_v35 = vld [vmem:[%s3068_s3 + $0xa8] sm:$0xff] }
  0x67   : > { %576 = vrot.lane.b32.xlu2 %v2473_v61, %s1995_s29  ;;  %1050 = vmatpush.msrb.mxu0 %v1670_v44 }
  0x68   : > { %1013 = vmatpush.msrb.mxu2 %v1650_v40  ;;  %973 = vmatpush.msrb.mxu3 %v1633_v48  ;;  %v647_v40 = vld [vmem:[%s3068_s3 + $0xa0] sm:$0xff]  ;;  %v645_v48 = vld [vmem:[%s3068_s3 + $0x90] sm:$0xff] }
  0x69   : > { %1051 = vmatpush.msrb.mxu0 %v1669_v50  ;;  %725 = vmatpush.msrb.mxu1 %v657_v54 }
  0x6a   : > { %580 = vrot.lane.b32.xlu1 %v2467_v57, %s1995_s29  ;;  %1014 = vmatpush.msrb.mxu2 %v1649_v7 }
  0x6b   : > { %974 = vmatpush.msrb.mxu3 %v1632_v49  ;;  %1052 = vmatpush.msrb.mxu0 %v1668_v55 }
  0x6c   : > { %1015 = vmatpush.msrb.mxu2 %v1648_v47  ;;  %726 = vmatpush.msrb.mxu1 %v656_v62  ;;  %v644_v47 = vld [vmem:[%s3068_s3 + $0x88] sm:$0xff] }
  0x6d   : > { %578 = vrot.lane.b32.xlu0 %v2482_v3, %s1995_s29  ;;  %1053 = vmatpush.msrb.mxu0 %v1667_v11 }
  0x6e   : > { %1710 = vmatpush.msra.mxu2 %v1671_v26  ;;  %727 = vmatpush.msrb.mxu1 %v655_v0 }
  0x6f   : > { %582 = vrot.lane.b32.xlu2 %v2558_v8, %s1995_s29 }
  0x70   : > { %1711 = vmatpush.msra.mxu2 %v1670_v44  ;;  %728 = vmatpush.msrb.mxu1 %v654_v12 }
  0x72   : > { %1712 = vmatpush.msra.mxu2 %v1669_v50  ;;  %729 = vmatpush.msrb.mxu1 %v653_v13 }
  0x74   : > { %1713 = vmatpush.msra.mxu2 %v1668_v55  ;;  %730 = vmatpush.msrb.mxu1 %v652_v14  ;;  %v643_v55 = vld [vmem:[%s3068_s3 + $0x80] sm:$0xff] }
  0x76   : > { %1714 = vmatpush.msra.mxu2 %v1667_v11  ;;  %731 = vmatpush.msrb.mxu1 %v651_v63 }
  0x78   : > { %732 = vmatpush.msrb.mxu1 %v650_v16 }
  0x7a   : > { %733 = vmatpush.msrb.mxu1 %v649_v22 }
  0x7c   : > { %734 = vmatpush.msrb.mxu1 %v648_v35 }
  0x7e   : > { %735 = vmatpush.msrb.mxu1 %v647_v40 }
  0x80   : > { %736 = vmatpush.msrb.mxu1 %v646_v45 }
  0x82   : > { %737 = vmatpush.msrb.mxu1 %v645_v48 }
  0x84   : > { %738 = vmatpush.msrb.mxu1 %v644_v47 }
  0x86   : > { %739 = vmatpush.msrb.mxu1 %v643_v55 }
  0x89   : > { %v2586_v56 = vpop.permute.xlu2 %1814 }
  0x8a   : > { %v1817_v59 = vunpack.i.h.bf16 %v2586_v56 }
  0x8c   : > { %v615_v6 = vsel %vm610_vm7, %v2167_v20, %v1817_v59  ;;  %v1666_v20 = vld [vmem:[%s3068_s3 + $0x250] sm:$0xff] }
  0x8d   : > { %711 = vmatmul.f32.vlgmr.msra.gmra.mxu1 %v615_v6  ;;  %1054 = vmatpush.msrb.mxu0 %v1666_v20 }
  0x8e   : > { %1715 = vmatpush.msra.mxu2 %v1666_v20 }
  0x8f   : > { %1055 = vmatpush.msrb.mxu0 %v1665_v21 }
  0x90   : > { %1716 = vmatpush.msra.mxu2 %v1665_v21 }
  0x91   : > { %1056 = vmatpush.msrb.mxu0 %v1664_v1  ;;  %v2629_v28 = vpop.permute.xlu2 %1819 }
  0x92   : > { %1717 = vmatpush.msra.mxu2 %v1664_v1  ;;  %v1821_v54 = vunpack.i.l.bf16 %v2629_v28 }
  0x94   : > { %v888_v12 = vsel %vm610_vm7, %v1821_v54, %v2207_v39  ;;  %v1816_v39 = vunpack.i.l.bf16 %v2586_v56  ;;  %v1822_v56 = vunpack.i.h.bf16 %v2629_v28 }
  0x96   : > { %v896_v1 = vsel %vm610_vm7, %v1816_v39, %v2426_v38  ;;  %v897_v38 = vsel %vm610_vm7, %v1822_v56, %v2418_v29 }
  0x99   : > { %v873_v0 = vpop.permute.xlu2 %872 }
  0x9c   : > { %v1805_v15 = vpop.permute.xlu1 %1804 }
  0x9d   : > { %v1806_v18 = vunpack.i.l.bf16 %v1805_v15 }
  0x9f   : > { %v1795_v25 = vpop.permute.xlu0 %1794  ;;  %v886_v26 = vsel %vm610_vm7, %v1806_v18, %v2191_v33 }
  0xa0   : > { %v1796_v27 = vunpack.i.l.bf16 %v1795_v25  ;;  %975 = vmatmul.f32.vlgmr.msrb.gmra.mxu3 %v886_v26  ;;  %v1797_v49 = vunpack.i.h.bf16 %v1795_v25 }
  0xa1   : > { %v875_v21 = vpop.permute.xlu2 %874 }
  0xa2   : > { %v611_v44 = vsel %vm610_vm7, %v2174_v24, %v1796_v27  ;;  %v612_v59 = vsel %vm610_vm7, %v2149_v9, %v1797_v49 }
  0xa3   : > { %699 = vmatmul.f32.vlgmr.msra.gmra.mxu0 %v611_v44 }
  0xa4   : > { %v1810_v33 = vpop.permute.xlu1 %1809 }
  0xa5   : > { %v1812_v7 = vunpack.i.h.bf16 %v1810_v33 }
  0xa7   : > { %v1800_v50 = vpop.permute.xlu0 %1799  ;;  %v887_v24 = vsel %vm610_vm7, %v1812_v7, %v2184_v30  ;;  %v1807_v30 = vunpack.i.h.bf16 %v1805_v15  ;;  %v1811_v15 = vunpack.i.l.bf16 %v1810_v33 }
  0xa8   : > { %v1801_v52 = vunpack.i.l.bf16 %v1800_v50  ;;  %978 = vmatmul.f32.gmra.mxu3 %v887_v24  ;;  %v1802_v13 = vunpack.i.h.bf16 %v1800_v50 }
  0xa9   : > { %v895_v9 = vsel %vm610_vm7, %v1807_v30, %v2362_v60  ;;  %v614_v60 = vsel %vm610_vm7, %v2164_v19, %v1811_v15  ;;  %v1845_v26 = vpop.permute.xlu2 %1844 }
  0xaa   : > { %v894_v62 = vsel %vm610_vm7, %v1801_v52, %v2316_v34  ;;  %v613_v63 = vsel %vm610_vm7, %v2152_v10, %v1802_v13  ;;  %v1847_v28 = vunpack.i.h.bf16 %v1845_v26  ;;  %v1846_v52 = vunpack.i.l.bf16 %v1845_v26 }
  0xab   : > { %702 = vmatmul.f32.gmra.mxu0 %v612_v59  ;;  %1016 = vmatmul.f32.vlgmr.msrb.gmra.mxu2 %v894_v62 }
  0xac   : > { %v1825_v6 = vpop.permute.xlu1 %1824  ;;  %v619_v45 = vsel %vm610_vm7, %v2212_v41, %v1847_v28 }
  0xad   : > { %v1826_v11 = vunpack.i.l.bf16 %v1825_v6  ;;  %v1827_v34 = vunpack.i.h.bf16 %v1825_v6 }
  0xaf   : > { %v871_v20 = vpop.permute.xlu0 %870  ;;  %v616_v14 = vsel %vm610_vm7, %v2187_v32, %v1826_v11  ;;  %v889_v22 = vsel %vm610_vm7, %v1827_v34, %v2198_v36 }
  0xb0   : > { %714 = vmatmul.f32.gmra.mxu1 %v616_v14  ;;  %981 = vmatmul.f32.gmra.mxu3 %v888_v12 }
  0xb1   : > { %v1855_v48 = vpop.permute.xlu2 %1854 }
  0xb2   : > { %v1856_v49 = vunpack.i.l.bf16 %v1855_v48  ;;  %v1857_v41 = vunpack.i.h.bf16 %v1855_v48 }
  0xb3   : > { %705 = vmatmul.f32.gmra.mxu0 %v613_v63  ;;  %1019 = vmatmul.f32.gmra.mxu2 %v895_v9 }
  0xb4   : > { %v1835_v16 = vpop.permute.xlu1 %1834  ;;  %v620_v50 = vsel %vm610_vm7, %v2171_v23, %v1856_v49  ;;  %v893_v55 = vsel %vm610_vm7, %v1857_v41, %v2293_v17  ;;  %v900_v23 = vsel %vm610_vm7, %v1846_v52, %v2467_v57 }
  0xb5   : > { %v1836_v10 = vunpack.i.l.bf16 %v1835_v16  ;;  %v1837_v47 = vunpack.i.h.bf16 %v1835_v16 }
  0xb7   : > { %v1830_v32 = vpop.permute.xlu0 %1829  ;;  %v890_v36 = vsel %vm610_vm7, %v1836_v10, %v2215_v42 }
  0xb8   : > { %v1832_v18 = vunpack.i.h.bf16 %v1830_v32  ;;  %984 = vmatmul.f32.gmra.mxu3 %v889_v22  ;;  %v1831_v44 = vunpack.i.l.bf16 %v1830_v32 }
  0xb9   : > { %v573_v54 = vpop.permute.xlu2 %572 }
  0xba   : > { %v617_v25 = vsel %vm610_vm7, %v2202_v37, %v1832_v18  ;;  %v898_v29 = vsel %vm610_vm7, %v1831_v44, %v2473_v61  ;;  %v899_v61 = vsel %vm610_vm7, %v1837_v47, %v2482_v3 }
  0xbb   : > { %708 = vmatmul.f32.gmra.mxu0 %v614_v60  ;;  %717 = vmatmul.f32.gmra.mxu1 %v617_v25 }
  0xbc   : > { %1022 = vmatmul.f32.gmra.mxu2 %v896_v1  ;;  %v877_v35 = vpop.permute.xlu1 %876 }
  0xbf   : > { %v1840_v27 = vpop.permute.xlu0 %1839 }
  0xc0   : > { %v1841_v19 = vunpack.i.l.bf16 %v1840_v27  ;;  %987 = vmatmul.f32.gmra.mxu3 %v890_v36  ;;  %v1842_v40 = vunpack.i.h.bf16 %v1840_v27 }
  0xc1   : > { %v577_v30 = vpop.permute.xlu2 %576 }
  0xc2   : > { %v618_v37 = vsel %vm610_vm7, %v2245_v58, %v1841_v19  ;;  %v891_v42 = vsel %vm610_vm7, %v1842_v40, %v2233_v51  ;;  %v623_v57 = vsel %vm610_vm7, %v2267_v5, %v577_v30 }
  0xc3   : > { %720 = vmatmul.f32.gmra.mxu1 %v618_v37  ;;  %1672 = vmatmul.msk.f32.vlgmr.msrb.gmra.mxu0 %vm610_vm7, %v871_v20  ;;  %v2718_v13 = vpop.f32.mrf.mxu3  ;;  %v2722_v20 = vpop.f32.mrf.mxu2 }
  0xc4   : > { %1025 = vmatmul.f32.gmra.mxu2 %v897_v38  ;;  %v879_v7 = vpop.permute.xlu1 %878 }
  0xc7   : > { %v1850_v33 = vpop.permute.xlu0 %1849 }
  0xc8   : > { %990 = vmatmul.f32.gmra.mxu3 %v891_v42  ;;  %v1851_v58 = vunpack.i.l.bf16 %v1850_v33  ;;  %v1852_v3 = vunpack.i.h.bf16 %v1850_v33 }
  0xc9   : > { %v583_v12 = vpop.permute.xlu2 %582 }
  0xca   : > { %v892_v51 = vsel %vm610_vm7, %v1851_v58, %v2264_v4  ;;  %v621_v4 = vsel %vm610_vm7, %v2221_v46, %v573_v54  ;;  %v901_v17 = vsel %vm610_vm7, %v1852_v3, %v2558_v8  ;;  %v626_v5 = vsel %vm610_vm7, %v2329_v43, %v583_v12 }
  0xcb   : > { %740 = vmatmul.f32.vlgmr.msrb.gmra.mxu1 %v619_v45  ;;  %1673 = vmatmul.msk.f32.gmra.mxu0 %vm610_vm7, %v873_v0  ;;  %v2724_v14 = vpop.f32.mrf.mxu3 }
  0xcc   : > { %1028 = vmatmul.f32.gmra.mxu2 %v898_v29  ;;  %v885_v24 = vpop.permute.xlu1 %884 }
  0xcf   : > { %v881_v59 = vpop.permute.xlu0 %880 }
  0xd0   : > { %993 = vmatmul.f32.gmra.mxu3 %v892_v51 }
  0xd3   : > { %743 = vmatmul.f32.gmra.mxu1 %v620_v50  ;;  %1674 = vmatmul.msk.f32.gmra.mxu0 %vm610_vm7, %v875_v21 }
  0xd4   : > { %1031 = vmatmul.f32.gmra.mxu2 %v899_v61  ;;  %v575_v62 = vpop.permute.xlu1 %574  ;;  %v2728_v9 = vpop.f32.mrf.mxu3 }
  0xd5   : > { %v622_v0 = vsel %vm610_vm7, %v2237_v53, %v575_v62 }
  0xd7   : > { %v883_v46 = vpop.permute.xlu0 %882 }
  0xd8   : > { %996 = vmatmul.f32.gmra.mxu3 %v893_v55 }
  0xdb   : > { %746 = vmatmul.f32.gmra.mxu1 %v621_v4  ;;  %1675 = vmatmul.msk.f32.gmra.mxu0 %vm610_vm7, %v877_v35 }
  0xdc   : > { %1034 = vmatmul.f32.gmra.mxu2 %v900_v23  ;;  %v581_v8 = vpop.permute.xlu1 %580 }
  0xdd   : > { %v625_v11 = vsel %vm610_vm7, %v2313_v31, %v581_v8 }
  0xdf   : > { %v579_v6 = vpop.permute.xlu0 %578  ;;  %v2732_v63 = vpop.f32.mrf.mxu3 }
  0xe0   : > { %v624_v53 = vsel %vm610_vm7, %v2257_v2, %v579_v6  ;;  %v2726_v2 = vpop.f32.mrf.mxu2 }
  0xe3   : > { %749 = vmatmul.f32.gmra.mxu1 %v622_v0  ;;  %1676 = vmatmul.msk.f32.gmra.mxu0 %vm610_vm7, %v879_v7 }
  0xe4   : > { %1037 = vmatmul.f32.gmra.mxu2 %v901_v17 }
  0xe8   : > { %v2730_v34 = vpop.f32.mrf.mxu2 }
  0xeb   : > { %752 = vmatmul.f32.gmra.mxu1 %v623_v57  ;;  %1677 = vmatmul.msk.f32.gmra.mxu0 %vm610_vm7, %v881_v59 }
  0xec   : > { %1679 = vmatmul.msk.f32.vlgmr.msra.gmra.mxu2 %vm610_vm7, %v885_v24 }
  0xf0   : > { %v791_v15 = vpop.f32.mrf.mxu2 }
  0xf3   : > { %755 = vmatmul.f32.gmra.mxu1 %v624_v53  ;;  %1678 = vmatmul.msk.f32.gmra.mxu0 %vm610_vm7, %v883_v46 }
  0xfb   : > { %758 = vmatmul.f32.gmra.mxu1 %v625_v11 }
 0x103   : > { %761 = vmatmul.f32.gmra.mxu1 %v626_v5 }
 0x10a   : > { %v2736_v21 = vpop.f32.mrf.mxu1 }
 0x120   : > { %v2734_v31 = vpop.f32.mrf.mxu0 }
 0x123   : > { %v976_v39 = vpop.f32.mrf.mxu3 }
 0x128   : > { %v2738_v43 = vpop.f32.mrf.mxu0 }
 0x12b   : > { %v979_v32 = vpop.f32.mrf.mxu3 }
 0x12d   : > { %v2740_v22 = vpop.f32.mrf.mxu1 }
 0x12e   : > { %v1017_v16 = vpop.f32.mrf.mxu2 }
 0x12f   : > { %v1018_v56 = vadd.f32 %v1017_v16, %v976_v39 }
 0x130   : > { %v706_v18 = vpop.f32.mrf.mxu0 }
 0x133   : > { %v982_v25 = vpop.f32.mrf.mxu3 }
 0x136   : > { %v1020_v60 = vpop.f32.mrf.mxu2 }
 0x137   : > { %v1021_v40 = vadd.f32 %v1020_v60, %v979_v32 }
 0x138   : > { %v709_v1 = vpop.f32.mrf.mxu0  ;;  %v2742_v10 = vpop.f32.mrf.mxu1 }
 0x13b   : > { %v985_v19 = vpop.f32.mrf.mxu3 }
 0x13f   : > { %v1023_v36 = vpop.f32.mrf.mxu2 }
 0x140   : > { %v2744_v26 = vpop.f32.mrf.mxu1  ;;  %v1058_v27 = vpop.f32.mrf.mxu0  ;;  %v1024_v33 = vadd.f32 %v1023_v36, %v982_v25 }
 0x141   : > { %v1059_v35 = vadd.f32 %v1058_v27, %v1018_v56 }
 0x143   : > { %1090 = vrot.lane.b32.xlu0 %v1059_v35, %s1995_s29  ;;  %v988_v42 = vpop.f32.mrf.mxu3 }
 0x147   : > { %v1026_v38 = vpop.f32.mrf.mxu2 }
 0x148   : > { %v741_v37 = vpop.f32.mrf.mxu1  ;;  %v1061_v28 = vpop.f32.mrf.mxu0  ;;  %v1027_v58 = vadd.f32 %v1026_v38, %v985_v19 }
 0x149   : > { %v1062_v44 = vadd.f32 %v1061_v28, %v1021_v40 }
 0x14b   : > { %1092 = vrot.lane.b32.xlu1 %v1062_v44, %s1995_s29  ;;  %v991_v49 = vpop.f32.mrf.mxu3 }
 0x14f   : > { %v1029_v45 = vpop.f32.mrf.mxu2 }
 0x150   : > { %v744_v29 = vpop.f32.mrf.mxu1  ;;  %v1064_v48 = vpop.f32.mrf.mxu0  ;;  %v1030_v61 = vadd.f32 %v1029_v45, %v988_v42 }
 0x151   : > { %v1065_v7 = vadd.f32 %v1064_v48, %v1024_v33  ;;  %v745_v38 = vadd.f32 %v744_v29, %v2738_v43 }
 0x153   : > { %1094 = vrot.lane.b32.xlu2 %v1065_v7, %s1995_s29  ;;  %v994_v55 = vpop.f32.mrf.mxu3  ;;  %v786_v28 = vadd.f32 %v2726_v2, %v745_v38 }
 0x157   : > { %v1032_v47 = vpop.f32.mrf.mxu2 }
 0x158   : > { %v747_v51 = vpop.f32.mrf.mxu1  ;;  %v1067_v50 = vpop.f32.mrf.mxu0  ;;  %v1033_v3 = vadd.f32 %v1032_v47, %v991_v49 }
 0x159   : > { %v1068_v41 = vadd.f32 %v1067_v50, %v1027_v58  ;;  %v748_v5 = vadd.f32 %v747_v51, %v706_v18 }
 0x15b   : > { %1096 = vrot.lane.b32.xlu0 %v1068_v41, %s1995_s29  ;;  %v997_v46 = vpop.f32.mrf.mxu3  ;;  %v789_v39 = vadd.f32 %v2730_v34, %v748_v5 }
 0x15f   : > { %v1035_v24 = vpop.f32.mrf.mxu2 }
 0x160   : > { %v750_v52 = vpop.f32.mrf.mxu1  ;;  %v1070_v54 = vpop.f32.mrf.mxu0  ;;  %v1036_v57 = vadd.f32 %v1035_v24, %v994_v55 }
 0x161   : > { %v751_v4 = vadd.f32 %v750_v52, %v709_v1  ;;  %v1071_v23 = vadd.f32 %v1070_v54, %v1030_v61  ;;  %v742_v1 = vadd.f32 %v741_v37, %v2734_v31 }
 0x163   : > { %v2750_v59 = vadd.f32 %v791_v15, %v751_v4  ;;  %1098 = vrot.lane.b32.xlu1 %v1071_v23, %s1995_s29  ;;  %v2759_v15 = vld [vmem:[%s3069_s4] ss:$0 sm:$0xff]  ;;  %v783_v36 = vadd.f32 %v2722_v20, %v742_v1 }
 0x167   : > { %v1038_v62 = vpop.f32.mrf.mxu2 }
 0x168   : > { %v1073_v0 = vpop.f32.mrf.mxu0  ;;  %v1039_v30 = vadd.f32 %v1038_v62, %v997_v46  ;;  %v753_v12 = vpop.f32.mrf.mxu1 }
 0x169   : > { %v1074_v17 = vadd.f32 %v1073_v0, %v1033_v3  ;;  %v754_v24 = vadd.f32 %v753_v12, %v2736_v21 }
 0x16b   : > { %1100 = vrot.lane.b32.xlu2 %v1074_v17, %s1995_s29 }
 0x16f   : > { %v1079_v6 = vpop.f32.mrf.mxu2 }
 0x170   : > { %v1080_v53 = vadd.f32 %v1079_v6, %v1039_v30  ;;  %v1076_v8 = vpop.f32.mrf.mxu0  ;;  %v756_v25 = vpop.f32.mrf.mxu1  ;;  %v2811_v30 = vadd.f32 %v2718_v13, %v754_v24 }
 0x171   : > { %v1077_v11 = vadd.f32 %v1076_v8, %v1036_v57  ;;  %v757_v43 = vadd.f32 %v756_v25, %v2740_v22 }
 0x172   : > { %1104 = vrot.lane.b32.xlu1 %v1080_v53, %s1995_s29 }
 0x173   : > { %1102 = vrot.lane.b32.xlu0 %v1077_v11, %s1995_s29  ;;  %v798_v51 = vadd.f32 %v2724_v14, %v757_v43  ;;  %s376_s29 = sand.u32 1, %s1969_s25  }
 0x174   : > { %s1613_s23 = sshll.u32 %s376_s29, 6  ;;  %s1471_s16 = scalar_lea.sflag [#allocation3], %s376_s29 }
 0x175   : > { %s2921_s27 = scalar_lea.vmem [#allocation2], %s1613_s23 }
 0x176   : > { %s1485_s15 = sshll.u32 %s2921_s27, 4  ;;  %s1486_s15 = int_to_ptr.vmem [resolvable:$true] %s1485_s15 }
 0x178   : > { %v759_v31 = vpop.f32.mrf.mxu1 }
 0x179   : > { %v760_v54 = vadd.f32 %v759_v31, %v2742_v10 }
 0x17b   : > { %v2815_v57 = vadd.f32 %v2728_v9, %v760_v54 }
 0x180   : > { %v762_v50 = vpop.f32.mrf.mxu1 }
 0x181   : > { %v763_v23 = vadd.f32 %v762_v50, %v2744_v26 }
 0x183   : > { %v2818_v6 = vadd.f32 %v2732_v63, %v763_v23 }
 0x1ad   : > { %v1095_v16 = vpop.permute.xlu2 %1094 }
 0x1ae   : > { %v1116_v32 = vsel %vm610_vm7, %v789_v39, %v1095_v16 }
 0x1af   : > { %v2764_v60 = vadd.f32 %v2759_v15, %v1116_v32 }
 0x1b1   : > { %v2768_v56 = vmul.f32 0.70710677, %v2764_v60  ;;  %v2828_v1 = vmul.f32 0.5, %v2764_v60 }
 0x1b3   : > { %v1168_v18 = vand.u32 2147483647, %v2768_v56  ;;  %vm1152_vm13 = vcmp.ge.f32.partialorder %v2768_v56, 0.0 }
 0x1b5   : > { %v1176_v27 = vmul.f32 0.3275911, %v1168_v18  ;;  %v1091_v35 = vpop.permute.xlu0 %1090  ;;  %v1384_v17 = vsub.f32 0.0, %v1168_v18 }
 0x1b6   : > { %v1114_v34 = vsel %vm610_vm7, %v783_v36, %v1091_v35 }
 0x1b7   : > { %v1184_v19 = vadd.f32 1.0, %v1176_v27  ;;  %v2774_v40 = vadd.f32 %v2759_v15, %v1114_v34  ;;  %v1392_v12 = vmul.f32 %v1384_v17, %v1168_v18 }
 0x1b9   : > { %1859 = vrcp.f32 %v1184_v19  ;;  %v2778_v37 = vmul.f32 0.70710677, %v2774_v40  ;;  %v1231_v49 = vand.u32 2147483648, %v1184_v19  ;;  %v1229_v61 = vand.u32 2147483647, %v1184_v19 }
 0x1ba   : > { %vm1225_vm9 = vweird.f32 %v1184_v19  ;;  %v2867_v17 = vmul.f32 0.5, %v2774_v40 }
 0x1bb   : > { %v2782_v44 = vand.u32 2147483647, %v2778_v37  ;;  %v1232_v3 = vor.u32 1.1754944e-38, %v1231_v49  ;;  %vm1230_vm11 = vcmp.eq.f32.partialorder %v1229_v61, 8.507059e+37  ;;  %vm1150_vm2 = vcmp.ge.f32.partialorder %v2778_v37, 0.0 }
 0x1bd   : > { %v1093_v20 = vpop.permute.xlu1 %1092  ;;  %v1174_v42 = vmul.f32 0.3275911, %v2782_v44  ;;  %v1382_v39 = vsub.f32 0.0, %v2782_v44 }
 0x1be   : > { %v1115_v33 = vsel %vm610_vm7, %v786_v28, %v1093_v20 }
 0x1bf   : > { %v1860_v45 = vpop.eup %1859  ;;  %v2787_v48 = vadd.f32 %v2759_v15, %v1115_v33  ;;  %v1182_v7 = vadd.f32 1.0, %v1174_v42  ;;  %v1390_v28 = vmul.f32 %v1382_v39, %v2782_v44 }
 0x1c0   : > { %v1221_v29 = vmul.f32 %v1860_v45, %v1184_v19  ;;  %vm1226_vm8 = vweird.f32 %v1860_v45  ;;  %v1402_v19 = vmul.f32 1.442695, %v1392_v12 }
 0x1c1   : > { %v2791_v58 = vmul.f32 0.70710677, %v2787_v48  ;;  %1861 = vrcp.f32 %v1182_v7  ;;  %vm1227_vm10 = vmor %vm1225_vm9, %vm1226_vm8  ;;  %v1201_v5 = vand.u32 2147483648, %v1182_v7  ;;  %v1199_v13 = vand.u32 2147483647, %v1182_v7 }
 0x1c2   : > { %v1222_v2 = vsub.f32 1.0, %v1221_v29  ;;  %vm1195_vm14 = vweird.f32 %v1182_v7 }
 0x1c3   : > { %v2794_v47 = vand.u32 2147483647, %v2791_v58  ;;  %v1202_v60 = vor.u32 1.1754944e-38, %v1201_v5  ;;  %vm1200_vm0 = vcmp.eq.f32.partialorder %v1199_v13, 8.507059e+37 }
 0x1c4   : > { %v1223_v41 = vmul.f32 %v1860_v45, %v1222_v2 }
 0x1c5   : > { %v1175_v22 = vmul.f32 0.3275911, %v2794_v47  ;;  %v1101_v52 = vpop.permute.xlu2 %1100 }
 0x1c6   : > { %v1224_v55 = vadd.f32 %v1860_v45, %v1223_v41  ;;  %v1119_v4 = vsel %vm610_vm7, %v798_v51, %v1101_v52  ;;  %v1996_v51 = vmov -1.0  }
 0x1c7   : > { %v2802_v14 = vadd.f32 1.0, %v1175_v22  ;;  %v2805_v62 = vadd.f32 %v2759_v15, %v1119_v4  ;;  %v1862_v0 = vpop.eup %1861  ;;  %v1160_v50 = vsel %vm1152_vm13, 1.0, %v1996_v51  ;;  %v2881_v40 = vsel %vm1150_vm2, 1.0, %v1996_v51 }
 0x1c8   : > { %v1228_v21 = vsel %vm1227_vm10, %v1860_v45, %v1224_v55  ;;  %v1191_v10 = vmul.f32 %v1862_v0, %v1182_v7  ;;  %vm1196_vm12 = vweird.f32 %v1862_v0  ;;  %v1383_v7 = vsub.f32 0.0, %v2794_v47 }
 0x1c9   : > { %v2807_v46 = vsel %vm1230_vm11, %v1232_v3, %v1228_v21  ;;  %1863 = vrcp.f32 %v2802_v14  ;;  %v2821_v8 = vmul.f32 0.70710677, %v2805_v62  ;;  %vm1197_vm15 = vmor %vm1195_vm14, %vm1196_vm12  ;;  %v1216_v29 = vand.u32 2147483648, %v2802_v14 }
 0x1ca   : > { %v1312_v26 = vmul.f32 1.0614054, %v2807_v46  ;;  %v1192_v53 = vsub.f32 1.0, %v1191_v10  ;;  %v1214_v49 = vand.u32 2147483647, %v2802_v14  ;;  %vm1210_vm3 = vweird.f32 %v2802_v14 }
 0x1cb   : > { %v2825_v32 = vand.u32 2147483647, %v2821_v8  ;;  %v1217_v54 = vor.u32 1.1754944e-38, %v1216_v29  ;;  %v1391_v55 = vmul.f32 %v1383_v7, %v2794_v47  ;;  %v1398_v3 = vmul.f32 1.442695, %v1390_v28 }
 0x1cc   : > { %v1320_v11 = vadd.f32 -1.4531521, %v1312_v26  ;;  %v1193_v16 = vmul.f32 %v1862_v0, %v1192_v53  ;;  %vm1215_vm5 = vcmp.eq.f32.partialorder %v1214_v49, 8.507059e+37 }
 0x1cd   : > { %v1097_v9 = vpop.permute.xlu0 %1096  ;;  %v1179_v27 = vmul.f32 0.3275911, %v2825_v32 }
 0x1ce   : > { %v1328_v63 = vmul.f32 %v1320_v11, %v2807_v46  ;;  %v1117_v25 = vsel %vm610_vm7, %v2750_v59, %v1097_v9  ;;  %v1194_v36 = vadd.f32 %v1862_v0, %v1193_v16  ;;  %v1400_v16 = vmul.f32 1.442695, %v1391_v55 }
 0x1cf   : > { %v1864_v18 = vpop.eup %1863  ;;  %v2836_v35 = vadd.f32 %v2759_v15, %v1117_v25  ;;  %v2841_v59 = vadd.f32 1.0, %v1179_v27 }
 0x1d0   : > { %v1336_v34 = vadd.f32 1.4214138, %v1328_v63  ;;  %v1206_v38 = vmul.f32 %v1864_v18, %v2802_v14  ;;  %v1198_v31 = vsel %vm1197_vm15, %v1862_v0, %v1194_v36  ;;  %vm1211_vm1 = vweird.f32 %v1864_v18 }
 0x1d1   : > { %v2844_v42 = vsel %vm1200_vm0, %v1202_v60, %v1198_v31  ;;  %v2847_v45 = vmul.f32 0.70710677, %v2836_v35  ;;  %1865 = vrcp.f32 %v2841_v59  ;;  %vm1212_vm4 = vmor %vm1210_vm3, %vm1211_vm1  ;;  %v1274_v25 = vand.u32 2147483647, %v2841_v59 }
 0x1d2   : > { %v1344_v20 = vmul.f32 %v1336_v34, %v2807_v46  ;;  %v1207_v33 = vsub.f32 1.0, %v1206_v38  ;;  %v1310_v43 = vmul.f32 1.0614054, %v2844_v42  ;;  %1867 = vpow2.f32 %v1402_v19 }
 0x1d3   : > { %v2858_v61 = vand.u32 2147483647, %v2847_v45  ;;  %v1387_v19 = vsub.f32 0.0, %v2825_v32  ;;  %vm1270_vm8 = vweird.f32 %v2841_v59  ;;  %vm1275_vm10 = vcmp.eq.f32.partialorder %v1274_v25, 8.507059e+37 }
 0x1d4   : > { %v1352_v2 = vadd.f32 -0.28449672, %v1344_v20  ;;  %v1208_v44 = vmul.f32 %v1864_v18, %v1207_v33  ;;  %v1318_v41 = vadd.f32 -1.4531521, %v1310_v43  ;;  %vm1151_vm15 = vcmp.ge.f32.partialorder %v2791_v58, 0.0 }
 0x1d5   : > { %v1177_v56 = vmul.f32 0.3275911, %v2858_v61  ;;  %v1099_v4 = vpop.permute.xlu1 %1098  ;;  %vm1155_vm0 = vcmp.ge.f32.partialorder %v2821_v8, 0.0 }
 0x1d6   : > { %v1360_v24 = vmul.f32 %v1352_v2, %v2807_v46  ;;  %v1209_v22 = vadd.f32 %v1864_v18, %v1208_v44  ;;  %v1326_v52 = vmul.f32 %v1318_v41, %v2844_v42  ;;  %v1118_v12 = vsel %vm610_vm7, %v2811_v30, %v1099_v4 }
 0x1d7   : > { %v1866_v21 = vpop.eup %1865  ;;  %v2871_v14 = vadd.f32 1.0, %v1177_v56  ;;  %v1276_v30 = vand.u32 2147483648, %v2841_v59 }
 0x1d8   : > { %v1368_v23 = vadd.f32 0.2548296, %v1360_v24  ;;  %v1213_v0 = vsel %vm1212_vm4, %v1864_v18, %v1209_v22  ;;  %v1334_v10 = vadd.f32 1.4214138, %v1326_v52  ;;  %v1266_v11 = vmul.f32 %v1866_v21, %v2841_v59  ;;  %v1868_v5 = vpop.eup %1867 }
 0x1d9   : > { %v2869_v26 = vsel %vm1215_vm5, %v1217_v54, %v1213_v0  ;;  %1869 = vrcp.f32 %v2871_v14  ;;  %v2888_v18 = vadd.f32 %v2759_v15, %v1118_v12  ;;  %vm1271_vm6 = vweird.f32 %v1866_v21 }
 0x1da   : > { %v1376_v53 = vmul.f32 %v1368_v23, %v2807_v46  ;;  %v1311_v47 = vmul.f32 1.0614054, %v2869_v26  ;;  %v1342_v39 = vmul.f32 %v1334_v10, %v2844_v42  ;;  %1871 = vpow2.f32 %v1398_v3  ;;  %vm1272_vm9 = vmor %vm1270_vm8, %vm1271_vm6 }
 0x1db   : > { %v1267_v9 = vsub.f32 1.0, %v1266_v11  ;;  %1873 = vpow2.f32 %v1400_v16  ;;  %v2895_v60 = vmul.f32 0.70710677, %v2888_v18  ;;  %v1277_v43 = vor.u32 1.1754944e-38, %v1276_v30 }
 0x1dc   : > { %v1416_v46 = vmul.f32 %v1868_v5, %v1376_v53  ;;  %v1319_v13 = vadd.f32 -1.4531521, %v1311_v47  ;;  %v1350_v63 = vadd.f32 -0.28449672, %v1342_v39  ;;  %v1244_v24 = vand.u32 2147483647, %v2871_v14 }
 0x1dd   : > { %v1268_v27 = vmul.f32 %v1866_v21, %v1267_v9  ;;  %v2899_v29 = vand.u32 2147483647, %v2895_v60  ;;  %v1246_v22 = vand.u32 2147483648, %v2871_v14  ;;  %v1395_v12 = vmul.f32 %v1387_v19, %v2825_v32 }
 0x1de   : > { %v1424_v37 = vsub.f32 1.0, %v1416_v46  ;;  %v1327_v36 = vmul.f32 %v1319_v13, %v2869_v26  ;;  %v1358_v34 = vmul.f32 %v1350_v63, %v2844_v42  ;;  %v1385_v5 = vsub.f32 0.0, %v2858_v61 }
 0x1df   : > { %v1269_v28 = vadd.f32 %v1866_v21, %v1268_v27  ;;  %v1870_v20 = vpop.eup %1869  ;;  %v1178_v0 = vmul.f32 0.3275911, %v2899_v29  ;;  %vm1240_vm12 = vweird.f32 %v2871_v14  ;;  %v1247_v32 = vor.u32 1.1754944e-38, %v1246_v22 }
 0x1e0   : > { %v1432_v38 = vmul.f32 %v1424_v37, %v1160_v50  ;;  %v1335_v31 = vadd.f32 1.4214138, %v1327_v36  ;;  %v1366_v33 = vadd.f32 0.2548296, %v1358_v34  ;;  %v1872_v7 = vpop.eup %1871  ;;  %v1236_v50 = vmul.f32 %v1870_v20, %v2871_v14 }
 0x1e1   : > { %v1273_v49 = vsel %vm1272_vm9, %v1866_v21, %v1269_v28  ;;  %v1874_v23 = vpop.eup %1873  ;;  %vm1241_vm11 = vweird.f32 %v1870_v20  ;;  %v1891_v21 = vld [vmem:[%s2131_s9 + $0x10] sm:$0xff]  ;;  %v2919_v39 = vadd.f32 1.0, %v1178_v0  ;;  %vm1245_vm14 = vcmp.eq.f32.partialorder %v1244_v24, 8.507059e+37 }
 0x1e2   : > { %v1440_v2 = vadd.f32 1.0, %v1432_v38  ;;  %v1343_v44 = vmul.f32 %v1335_v31, %v2869_v26  ;;  %v1374_v59 = vmul.f32 %v1366_v33, %v2844_v42  ;;  %v2906_v41 = vsel %vm1275_vm10, %v1277_v43, %v1273_v49  ;;  %vm1242_vm13 = vmor %vm1240_vm12, %vm1241_vm11 }
 0x1e3   : > { %v1315_v55 = vmul.f32 1.0614054, %v2906_v41  ;;  %v1237_v56 = vsub.f32 1.0, %v1236_v50  ;;  %1875 = vrcp.f32 %v2919_v39  ;;  %v1408_v27 = vmul.f32 1.442695, %v1395_v12 }
 0x1e4   : > { %v1448_v52 = vmul.f32 %v1440_v2, %v2828_v1  ;;  %v1351_v54 = vadd.f32 -0.28449672, %v1343_v44  ;;  %v1105_v4 = vpop.permute.xlu1 %1104  ;;  %v1414_v3 = vmul.f32 %v1872_v7, %v1374_v59  ;;  %v1393_v31 = vmul.f32 %v1385_v5, %v2858_v61  ;;  %v1892_v7 = vld [vmem:[%s2131_s9] sm:$0xff] }
 0x1e5   : > { %v1121_v42 = vsel %vm610_vm7, %v2818_v6, %v1105_v4  ;;  %v1323_v47 = vadd.f32 -1.4531521, %v1315_v55  ;;  %v1238_v11 = vmul.f32 %v1870_v20, %v1237_v56  ;;  %v1103_v13 = vpop.permute.xlu0 %1102  ;;  %v1159_v44 = vsel %vm1151_vm15, 1.0, %v1996_v51 }
 0x1e6   : > { %v1456_v10 = vadd.f32 %v1891_v21, %v1448_v52  ;;  %v1359_v53 = vmul.f32 %v1351_v54, %v2869_v26  ;;  %v1422_v1 = vsub.f32 1.0, %v1414_v3  ;;  %v2930_v63 = vadd.f32 %v2759_v15, %v1121_v42 }
 0x1e7   : > { %v1331_v6 = vmul.f32 %v1323_v47, %v2906_v41  ;;  %v1239_v46 = vadd.f32 %v1870_v20, %v1238_v11  ;;  %1877 = vpow2.f32 %v1408_v27  ;;  %v1404_v24 = vmul.f32 1.442695, %v1393_v31  ;;  %v1893_v47 = vld [vmem:[%s2131_s9 + $0x8] sm:$0xff] }
 0x1e8   : > { %1464 = vst [vmem:[%s2921_s27 + $0x10] sm:$0xff] %v1456_v10  ;;  %v1367_v16 = vadd.f32 0.2548296, %v1359_v53  ;;  %v1430_v9 = vmul.f32 %v1422_v1, %v2881_v40  ;;  %v1120_v40 = vsel %vm610_vm7, %v2815_v57, %v1103_v13  ;;  %v2943_v28 = vmul.f32 0.70710677, %v2930_v63 }
 0x1e9   : > { %v1339_v30 = vadd.f32 1.4214138, %v1331_v6  ;;  %v1243_v37 = vsel %vm1242_vm13, %v1870_v20, %v1239_v46  ;;  %v2946_v57 = vadd.f32 %v2759_v15, %v1120_v40  ;;  %v1876_v58 = vpop.eup %1875  ;;  %v1135_v15 = vmul.f32 0.5, %v2787_v48 }
 0x1ea   : > { %v1375_v25 = vmul.f32 %v1367_v16, %v2869_v26  ;;  %v1438_v36 = vadd.f32 1.0, %v1430_v9  ;;  %v2933_v14 = vsel %vm1245_vm14, %v1247_v32, %v1243_v37  ;;  %v1251_v59 = vmul.f32 %v1876_v58, %v2919_v39 }
 0x1eb   : > { %v1347_v19 = vmul.f32 %v1339_v30, %v2906_v41  ;;  %v1313_v38 = vmul.f32 1.0614054, %v2933_v14  ;;  %vm1256_vm7 = vweird.f32 %v1876_v58  ;;  %v1259_v4 = vand.u32 2147483647, %v2919_v39 }
 0x1ec   : > { %v1415_v34 = vmul.f32 %v1874_v23, %v1375_v25  ;;  %v1446_v26 = vmul.f32 %v1438_v36, %v2867_v17  ;;  %v2951_v17 = vand.u32 2147483647, %v2943_v28  ;;  %v1252_v56 = vsub.f32 1.0, %v1251_v59 }
 0x1ed   : > { %v1355_v33 = vadd.f32 -0.28449672, %v1347_v19  ;;  %v1321_v43 = vadd.f32 -1.4531521, %v1313_v38  ;;  %v1261_v23 = vand.u32 2147483648, %v2919_v39  ;;  %v1878_v10 = vpop.eup %1877  ;;  %vm1255_vm1 = vweird.f32 %v2919_v39 }
 0x1ee   : > { %v1423_v20 = vsub.f32 1.0, %v1415_v34  ;;  %v1454_v2 = vadd.f32 %v1892_v7, %v1446_v26  ;;  %v1181_v22 = vmul.f32 0.3275911, %v2951_v17  ;;  %v1253_v21 = vmul.f32 %v1876_v58, %v1252_v56  ;;  %vm1257_vm2 = vmor %vm1255_vm1, %vm1256_vm7 }
 0x1ef   : > { %v1363_v49 = vmul.f32 %v1355_v33, %v2906_v41  ;;  %v1329_v50 = vmul.f32 %v1321_v43, %v2933_v14  ;;  %v2969_v53 = vmul.f32 0.70710677, %v2946_v57  ;;  %vm1260_vm3 = vcmp.eq.f32.partialorder %v1259_v4, 8.507059e+37 }
 0x1f0   : > { %v1431_v61 = vmul.f32 %v1423_v20, %v1159_v44  ;;  %1462 = vst [vmem:[%s2921_s27] sm:$0xff] %v1454_v2  ;;  %v2961_v3 = vadd.f32 1.0, %v1181_v22  ;;  %v1254_v5 = vadd.f32 %v1876_v58, %v1253_v21  ;;  %v1163_v39 = vsel %vm1155_vm0, 1.0, %v1996_v51 }
 0x1f1   : > { %v1371_v54 = vadd.f32 0.2548296, %v1363_v49  ;;  %v1337_v55 = vadd.f32 1.4214138, %v1329_v50  ;;  %v1386_v9 = vsub.f32 0.0, %v2899_v29  ;;  %v1139_v27 = vmul.f32 0.5, %v2805_v62 }
 0x1f2   : > { %v1439_v52 = vadd.f32 1.0, %v1431_v61  ;;  %1879 = vrcp.f32 %v2961_v3  ;;  %v1258_v46 = vsel %vm1257_vm2, %v1876_v58, %v1254_v5  ;;  %v2980_v32 = vand.u32 2147483647, %v2969_v53 }
 0x1f3   : > { %v1379_v42 = vmul.f32 %v1371_v54, %v2906_v41  ;;  %v1345_v48 = vmul.f32 %v1337_v55, %v2933_v14  ;;  %1881 = vpow2.f32 %v1404_v24  ;;  %v1262_v41 = vor.u32 1.1754944e-38, %v1261_v23 }
 0x1f4   : > { %v1447_v0 = vmul.f32 %v1439_v52, %v1135_v15  ;;  %v1180_v40 = vmul.f32 0.3275911, %v2980_v32  ;;  %vm1153_vm4 = vcmp.ge.f32.partialorder %v2847_v45, 0.0  ;;  %v1394_v31 = vmul.f32 %v1386_v9, %v2899_v29 }
 0x1f5   : > { %v1419_v1 = vmul.f32 %v1878_v10, %v1379_v42  ;;  %v1353_v12 = vadd.f32 -0.28449672, %v1345_v48  ;;  %v1263_v13 = vsel %vm1260_vm3, %v1262_v41, %v1258_v46  ;;  %v1304_v7 = vand.u32 2147483647, %v2961_v3  ;;  %v1895_v10 = vld [vmem:[%s2131_s9 + $0x18] sm:$0xff] }
 0x1f6   : > { %v1455_v11 = vadd.f32 %v1893_v47, %v1447_v0  ;;  %v1314_v37 = vmul.f32 1.0614054, %v1263_v13  ;;  %v1188_v20 = vadd.f32 1.0, %v1180_v40  ;;  %v1306_v2 = vand.u32 2147483648, %v2961_v3 }
 0x1f7   : > { %v1427_v16 = vsub.f32 1.0, %v1419_v1  ;;  %v1361_v6 = vmul.f32 %v1353_v12, %v2933_v14  ;;  %v1161_v29 = vsel %vm1153_vm4, 1.0, %v1996_v51  ;;  %v1406_v59 = vmul.f32 1.442695, %v1394_v31 }
 0x1f8   : > { %1463 = vst [vmem:[%s2921_s27 + $0x8] sm:$0xff] %v1455_v11  ;;  %v1880_v36 = vpop.eup %1879  ;;  %v1322_v8 = vadd.f32 -1.4531521, %v1314_v37  ;;  %1883 = vrcp.f32 %v1188_v20  ;;  %vm1300_vm6 = vweird.f32 %v2961_v3  ;;  %v1137_v52 = vmul.f32 0.5, %v2836_v35 }
 0x1f9   : > { %v1435_v25 = vmul.f32 %v1427_v16, %v1163_v39  ;;  %v1369_v30 = vadd.f32 0.2548296, %v1361_v6  ;;  %v1296_v38 = vmul.f32 %v1880_v36, %v2961_v3  ;;  %v1882_v26 = vpop.eup %1881  ;;  %vm1301_vm5 = vweird.f32 %v1880_v36 }
 0x1fa   : > { %v1330_v58 = vmul.f32 %v1322_v8, %v1263_v13  ;;  %vm1302_vm8 = vmor %vm1300_vm6, %vm1301_vm5  ;;  %v1307_v54 = vor.u32 1.1754944e-38, %v1306_v2  ;;  %vm1305_vm9 = vcmp.eq.f32.partialorder %v1304_v7, 8.507059e+37  ;;  %1885 = vpow2.f32 %v1406_v59  ;;  %v1896_v2 = vld [vmem:[%s2131_s9 + $0x20] sm:$0xff] }
 0x1fb   : > { %v1443_v34 = vadd.f32 1.0, %v1435_v25  ;;  %v1377_v19 = vmul.f32 %v1369_v30, %v2933_v14  ;;  %v1297_v62 = vsub.f32 1.0, %v1296_v38  ;;  %v1894_v14 = vld [vmem:[%s2131_s9 + $0x28] sm:$0xff]  ;;  %v1389_v0 = vsub.f32 0.0, %v2951_v17 }
 0x1fc   : > { %v1338_v49 = vadd.f32 1.4214138, %v1330_v58  ;;  %v1289_v5 = vand.u32 2147483647, %v1188_v20  ;;  %v1291_v41 = vand.u32 2147483648, %v1188_v20  ;;  %vm1154_vm11 = vcmp.ge.f32.partialorder %v2895_v60, 0.0 }
 0x1fd   : > { %v1451_v33 = vmul.f32 %v1443_v34, %v1139_v27  ;;  %v1417_v43 = vmul.f32 %v1882_v26, %v1377_v19  ;;  %v1298_v50 = vmul.f32 %v1880_v36, %v1297_v62  ;;  %v1397_v12 = vmul.f32 %v1389_v0, %v2951_v17 }
 0x1fe   : > { %v1346_v24 = vmul.f32 %v1338_v49, %v1263_v13  ;;  %v1884_v23 = vpop.eup %1883  ;;  %vm1285_vm12 = vweird.f32 %v1188_v20  ;;  %vm1290_vm14 = vcmp.eq.f32.partialorder %v1289_v5, 8.507059e+37  ;;  %v1388_v19 = vsub.f32 0.0, %v2980_v32 }
 0x1ff   : > { %v1459_v44 = vadd.f32 %v1894_v14, %v1451_v33  ;;  %v1425_v61 = vsub.f32 1.0, %v1417_v43  ;;  %v1299_v22 = vadd.f32 %v1880_v36, %v1298_v50  ;;  %v1281_v3 = vmul.f32 %v1884_v23, %v1188_v20 }
 0x200   : > { %v1354_v56 = vadd.f32 -0.28449672, %v1346_v24  ;;  %vm1286_vm10 = vweird.f32 %v1884_v23  ;;  %v1886_v39 = vpop.eup %1885  ;;  %v1412_v37 = vmul.f32 1.442695, %v1397_v12  ;;  %v1138_v26 = vmul.f32 0.5, %v2888_v18 }
 0x201   : > { %1467 = vst [vmem:[%s2921_s27 + $0x28] sm:$0xff] %v1459_v44  ;;  %v1433_v15 = vmul.f32 %v1425_v61, %v1161_v29  ;;  %v1303_v4 = vsel %vm1302_vm8, %v1880_v36, %v1299_v22  ;;  %v1282_v1 = vsub.f32 1.0, %v1281_v3  ;;  %vm1287_vm13 = vmor %vm1285_vm12, %vm1286_vm10  ;;  %v1292_v36 = vor.u32 1.1754944e-38, %v1291_v41 }
 0x202   : > { %v1308_v45 = vsel %vm1305_vm9, %v1307_v54, %v1303_v4  ;;  %v1362_v48 = vmul.f32 %v1354_v56, %v1263_v13  ;;  %1887 = vpow2.f32 %v1412_v37  ;;  %v1396_v43 = vmul.f32 %v1388_v19, %v2980_v32 }
 0x203   : > { %v1441_v55 = vadd.f32 1.0, %v1433_v15  ;;  %v1317_v21 = vmul.f32 1.0614054, %v1308_v45  ;;  %v1283_v46 = vmul.f32 %v1884_v23, %v1282_v1  ;;  %vm1157_vm15 = vcmp.ge.f32.partialorder %v2943_v28, 0.0 }
 0x204   : > { %v1370_v35 = vadd.f32 0.2548296, %v1362_v48  ;;  %v1410_v50 = vmul.f32 1.442695, %v1396_v43  ;;  %v1165_v32 = vsel %vm1157_vm15, 1.0, %v1996_v51  ;;  %vm1156_vm7 = vcmp.ge.f32.partialorder %v2969_v53, 0.0 }
 0x205   : > { %v1449_v42 = vmul.f32 %v1441_v55, %v1137_v52  ;;  %v1325_v11 = vadd.f32 -1.4531521, %v1317_v21  ;;  %v1284_v30 = vadd.f32 %v1884_v23, %v1283_v46  ;;  %v1141_v52 = vmul.f32 0.5, %v2930_v63 }
 0x206   : > { %v1378_v16 = vmul.f32 %v1370_v35, %v1263_v13  ;;  %v1162_v13 = vsel %vm1154_vm11, 1.0, %v1996_v51  ;;  %1889 = vpow2.f32 %v1410_v50  ;;  %v1140_v21 = vmul.f32 0.5, %v2946_v57 }
 0x207   : > { %v1457_v47 = vadd.f32 %v1895_v10, %v1449_v42  ;;  %v1333_v6 = vmul.f32 %v1325_v11, %v1308_v45  ;;  %v1288_v17 = vsel %vm1287_vm13, %v1884_v23, %v1284_v30  ;;  %v1897_v23 = vld [vmem:[%s2131_s9 + $0x38] sm:$0xff]  ;;  %v1164_v42 = vsel %vm1156_vm7, 1.0, %v1996_v51  ;;  %v1898_v10 = vld [vmem:[%s2131_s9 + $0x30] sm:$0xff] }
 0x208   : > { %v1418_v9 = vmul.f32 %v1886_v39, %v1378_v16  ;;  %v1293_v34 = vsel %vm1290_vm14, %v1292_v36, %v1288_v17  ;;  %v1888_v49 = vpop.eup %1887 }
 0x209   : > { %1465 = vst [vmem:[%s2921_s27 + $0x18] sm:$0xff] %v1457_v47  ;;  %v1341_v25 = vadd.f32 1.4214138, %v1333_v6  ;;  %v1316_v60 = vmul.f32 1.0614054, %v1293_v34 }
 0x20a   : > { %v1426_v27 = vsub.f32 1.0, %v1418_v9 }
 0x20b   : > { %v1349_v40 = vmul.f32 %v1341_v25, %v1308_v45  ;;  %v1324_v33 = vadd.f32 -1.4531521, %v1316_v60 }
 0x20c   : > { %v1434_v8 = vmul.f32 %v1426_v27, %v1162_v13  ;;  %v1890_v4 = vpop.eup %1889 }
 0x20d   : > { %v1357_v38 = vadd.f32 -0.28449672, %v1349_v40  ;;  %v1332_v7 = vmul.f32 %v1324_v33, %v1293_v34 }
 0x20e   : > { %v1442_v31 = vadd.f32 1.0, %v1434_v8 }
 0x20f   : > { %v1365_v20 = vmul.f32 %v1357_v38, %v1308_v45  ;;  %v1340_v61 = vadd.f32 1.4214138, %v1332_v7 }
 0x210   : > { %v1450_v58 = vmul.f32 %v1442_v31, %v1138_v26 }
 0x211   : > { %v1373_v62 = vadd.f32 0.2548296, %v1365_v20  ;;  %v1348_v29 = vmul.f32 %v1340_v61, %v1293_v34 }
 0x212   : > { %v1458_v14 = vadd.f32 %v1896_v2, %v1450_v58 }
 0x213   : > { %v1381_v44 = vmul.f32 %v1373_v62, %v1308_v45  ;;  %v1356_v15 = vadd.f32 -0.28449672, %v1348_v29 }
 0x214   : > { %1466 = vst [vmem:[%s2921_s27 + $0x20] sm:$0xff] %v1458_v14 }
 0x215   : > { %v1421_v18 = vmul.f32 %v1888_v49, %v1381_v44  ;;  %v1364_v22 = vmul.f32 %v1356_v15, %v1293_v34 }
 0x217   : > { %v1429_v59 = vsub.f32 1.0, %v1421_v18  ;;  %v1372_v55 = vadd.f32 0.2548296, %v1364_v22 }
 0x219   : > { %v1437_v24 = vmul.f32 %v1429_v59, %v1165_v32  ;;  %v1380_v28 = vmul.f32 %v1372_v55, %v1293_v34 }
 0x21b   : > { %v1445_v54 = vadd.f32 1.0, %v1437_v24  ;;  %v1420_v0 = vmul.f32 %v1890_v4, %v1380_v28 }
 0x21d   : > { %v1453_v56 = vmul.f32 %v1445_v54, %v1141_v52  ;;  %v1428_v63 = vsub.f32 1.0, %v1420_v0 }
 0x21f   : > { %v1461_v45 = vadd.f32 %v1897_v23, %v1453_v56  ;;  %v1436_v48 = vmul.f32 %v1428_v63, %v1164_v42 }
 0x221   : > { %1469 = vst [vmem:[%s2921_s27 + $0x38] sm:$0xff] %v1461_v45  ;;  %v1444_v3 = vadd.f32 1.0, %v1436_v48 }
 0x223   : > { %v1452_v53 = vmul.f32 %v1444_v3, %v1140_v21 }
 0x225   : > { %v1460_v47 = vadd.f32 %v1898_v10, %v1452_v53 }
 0x227   : > { %1468 = vst [vmem:[%s2921_s27 + $0x30] sm:$0xff] %v1460_v47 }
 0x228   : > { %1926 = shalt.err (!%p1923_p0)
}
 0x229   : > { %s1997_s9 = smov 128   ;;  %s1998_s29 = smov 8  }
 0x22a   : > { %1718 = dma.vmem_to_hbm [thread:$0]  (%p2090_p3), %s1486_s15, 1024, %s1488_s14, %s1471_s16, %s1997_s9, %s1997_s9, %s1998_s29  }
 0x22b PF: > { %p1724_p1 = scmp.ge.s32.totalorder %s1993_s6, 2  ;;  %s1502_s27 = sand.u32 1, %s1965_s24  }
 0x22c   : > { %s1503_s30 = scalar_lea.sflag [#allocation3], %s1502_s27 }
 0x22d   : > { %p1721_p2 = pnand %p1724_p1, %p2099_p8 }
 0x22f   : > { %p1722_p4 = pneg %p1721_p2 }
 0x231   : > { %1960 = dma.done.wait (%p1722_p4), %s1503_s30, 1024  }
 0x232   : > { %1962 = vsyncadd (%p1722_p4), %s1503_s30, 4294966272  ;;  %s20_s6 = sadd.s32 1, %s1993_s6   ;;  %s3085_s27 = sld [smem:[#allocation5_spill]] }
 0x233   : > { %p17_p5 = scmp.ge.s32.totalorder %s20_s6, 6   ;;  %s3086_s28 = sld [smem:[#allocation6_spill]] }
 0x234   : > { %s3087_s29 = sld [smem:[#allocation7_spill]]  ;;  %s3089_s24 = smov %s1969_s25 }
 0x235   : > { %s3088_s5 = sld [smem:[#allocation8_spill]]  ;;  %s3090_s25 = smov %s1973_s26 }
 0x236   : > { %s3091_s26 = smov %s2108_s17  ;;  %19 = sbr.rel (!%p17_p5) target bundleno = 5 (0x5), region = 90 }
 0x23b   :  { %1509 = vsyncpa [#allocation3], 1 }
 0x23c   :  { %1511 = vsyncpa [#allocation3 + $0x1], 1 }

</bundles_post_ra>
